<compile_context>
chip_gen: v7x
topology: tpu7x:2x2x1
jax: 0.10.0
libtpu: 0.0.40
codegen_flags: <defaults>
</compile_context>

<pallas_src>
import jax
import jax.numpy as jnp
from jax.experimental import pallas as pl
from jax.experimental.pallas import tpu as pltpu


def _unpermute_kernel(unperm_ref, *refs):
    # refs = (x_ref_0, ..., x_ref_{R-1}, o_ref).  The data-dependent row
    # selection happens in the BlockSpec index_maps (scalar-prefetched inverse
    # permutation); the body just places each gathered (B, D) slab into its
    # slot of the (B, R*D) output block.
    del unperm_ref
    x_refs, o_ref = refs[:-1], refs[-1]
    d = x_refs[0].shape[-1]
    for r, x_ref in enumerate(x_refs):
        o_ref[:, r * d:(r + 1) * d] = x_ref[...]


def _make_in_index_map(r, rows_per_step):
    def index_map(i, unperm_ref):
        # Block index along the (B, N*D) last axis == original row index.
        return (0, unperm_ref[i * rows_per_step + r])
    return index_map


def _rows_per_step(n, b, d, itemsize, max_rows=16, vmem_budget=8 * 1024 * 1024):
    """Largest divisor of N (<= max_rows) whose pipelined VMEM footprint fits."""
    best = 0
    for r in range(min(n, max_rows), 0, -1):
        if n % r != 0:
            continue
        # R inputs x 3 buffers + 1 output (width R*D) x 2 buffers.
        footprint = (3 * r + 2 * r) * b * d * itemsize
        if footprint <= vmem_budget:
            best = r
            break
    return best


def unpermute(x, unperm):
    """x: (B, N, D); unperm: (N,) int32.  Returns x[:, unperm]."""
    B, N, D = x.shape
    unperm = unperm.astype(jnp.int32)

    if N == 1:
        return x  # permutation of a single row is the identity.

    # Tiny inputs: kernel-launch / grid-step overhead dominates -- let XLA gather.
    if x.size * x.dtype.itemsize < 8 * 1024:
        return jnp.take(x, unperm, axis=1)

    # Lane (last-dim) blocks must be multiples of 128 unless they span the
    # full axis; odd D is cheaper to leave to XLA than to pad/mask here.
    if D % 128 != 0:
        return jnp.take(x, unperm, axis=1)

    R = _rows_per_step(N, B, D, x.dtype.itemsize)
    if R == 0:
        # TODO(synk): add a D-chunk grid axis for extremely large B*D slabs.
        return jnp.take(x, unperm, axis=1)

    # Free, contiguous reshape (no transpose => no extra HBM traffic).
    x2d = x.reshape(B, N * D)

    steps = N // R
    # Deeper input buffering only pays (and only makes sense) with enough
    # grid steps to keep more than two gather DMAs in flight.
    in_pipeline_mode = pl.Buffered(3) if steps >= 3 else None

    in_specs = [
        pl.BlockSpec(
            (B, D),
            _make_in_index_map(r, R),
            pipeline_mode=in_pipeline_mode,
        )
        for r in range(R)
    ]
    out_spec = pl.BlockSpec((B, R * D), lambda i, unperm_ref: (0, i))

    out2d = pl.pallas_call(
        _unpermute_kernel,
        out_shape=jax.ShapeDtypeStruct((B, N * D), x.dtype),
        grid_spec=pltpu.PrefetchScalarGridSpec(
            num_scalar_prefetch=1,
            grid=(steps,),
            in_specs=in_specs,
            out_specs=out_spec,
        ),
        compiler_params=pltpu.CompilerParams(
            dimension_semantics=("parallel",),
        ),
    )(unperm, *([x2d] * R))

    return out2d.reshape(B, N, D)


def build_unperm(indices):
    """Mirror of the PyTorch __init__:
    one_hot(indices).float().inverse().argmax(-1)  ==  argsort(indices)
    (the inverse of a permutation matrix is its transpose)."""
    return jnp.argsort(indices).astype(jnp.int32)


if __name__ == "__main__":
    key = jax.random.PRNGKey(0)
    k_perm, k_x = jax.random.split(key)

    B, N, D = 2, 32, 128  # batch, permuted axis length, feature dim

    # Deterministic permutation "parameter" (stands in for the registered buffer).
    indices = jax.random.permutation(k_perm, jnp.arange(N, dtype=jnp.int32))
    unperm = build_unperm(indices)

    x = jax.random.normal(k_x, (B, N, D), dtype=jnp.float32)

    out = unpermute(x, unperm)
    out = jax.block_until_ready(out)

    # Reference check: x[:, unperm]
    ref = jnp.take(x, unperm, axis=1)
    assert out.shape == ref.shape and out.dtype == ref.dtype
    assert bool(jnp.array_equal(out, ref))

    print("KERNEL_OK")
</pallas_src>

<mosaic_0001>
module attributes {stable_mosaic.version = 11 : i64} {
  func.func @_unpermute_kernel(%arg0: i32, %arg1: memref<32xi32, #tpu.memory_space<smem>>, %arg2: memref<2x128xf32, #tpu.memory_space<vmem>>, %arg3: memref<2x128xf32, #tpu.memory_space<vmem>>, %arg4: memref<2x128xf32, #tpu.memory_space<vmem>>, %arg5: memref<2x128xf32, #tpu.memory_space<vmem>>, %arg6: memref<2x128xf32, #tpu.memory_space<vmem>>, %arg7: memref<2x128xf32, #tpu.memory_space<vmem>>, %arg8: memref<2x128xf32, #tpu.memory_space<vmem>>, %arg9: memref<2x128xf32, #tpu.memory_space<vmem>>, %arg10: memref<2x128xf32, #tpu.memory_space<vmem>>, %arg11: memref<2x128xf32, #tpu.memory_space<vmem>>, %arg12: memref<2x128xf32, #tpu.memory_space<vmem>>, %arg13: memref<2x128xf32, #tpu.memory_space<vmem>>, %arg14: memref<2x128xf32, #tpu.memory_space<vmem>>, %arg15: memref<2x128xf32, #tpu.memory_space<vmem>>, %arg16: memref<2x128xf32, #tpu.memory_space<vmem>>, %arg17: memref<2x128xf32, #tpu.memory_space<vmem>>, %arg18: memref<2x2048xf32, #tpu.memory_space<vmem>>) attributes {dimension_semantics = [#tpu.dimension_semantics<parallel>], iteration_bounds = array<i64: 2>, scalar_prefetch = 1 : i64, scratch_operands = 0 : i64, tpu.core_type = #tpu.core_type<tc>, window_params = [{transform_indices = @transform_0, window_bounds = array<i64: 2, 128>}, {transform_indices = @transform_1, window_bounds = array<i64: 2, 128>}, {transform_indices = @transform_2, window_bounds = array<i64: 2, 128>}, {transform_indices = @transform_3, window_bounds = array<i64: 2, 128>}, {transform_indices = @transform_4, window_bounds = array<i64: 2, 128>}, {transform_indices = @transform_5, window_bounds = array<i64: 2, 128>}, {transform_indices = @transform_6, window_bounds = array<i64: 2, 128>}, {transform_indices = @transform_7, window_bounds = array<i64: 2, 128>}, {transform_indices = @transform_8, window_bounds = array<i64: 2, 128>}, {transform_indices = @transform_9, window_bounds = array<i64: 2, 128>}, {transform_indices = @transform_10, window_bounds = array<i64: 2, 128>}, {transform_indices = @transform_11, window_bounds = array<i64: 2, 128>}, {transform_indices = @transform_12, window_bounds = array<i64: 2, 128>}, {transform_indices = @transform_13, window_bounds = array<i64: 2, 128>}, {transform_indices = @transform_14, window_bounds = array<i64: 2, 128>}, {transform_indices = @transform_15, window_bounds = array<i64: 2, 128>}, {transform_indices = @transform_16, window_bounds = array<i64: 2, 2048>}]} {
    %c0 = arith.constant 0 : index
    %c0_0 = arith.constant 0 : index
    %0 = vector.load %arg2[%c0, %c0_0] : memref<2x128xf32, #tpu.memory_space<vmem>>, vector<2x128xf32>
    %c0_1 = arith.constant 0 : index
    %c0_2 = arith.constant 0 : index
    %1 = vector.load %arg18[%c0_1, %c0_2] : memref<2x2048xf32, #tpu.memory_space<vmem>>, vector<2x128xf32>
    tpu.vector_store %arg18[%c0_1, %c0_2], %0 {strides = array<i32>} : memref<2x2048xf32, #tpu.memory_space<vmem>>, vector<2x128xf32>,
    %c0_3 = arith.constant 0 : index
    %c0_4 = arith.constant 0 : index
    %2 = vector.load %arg3[%c0_3, %c0_4] : memref<2x128xf32, #tpu.memory_space<vmem>>, vector<2x128xf32>
    %c0_5 = arith.constant 0 : index
    %c128 = arith.constant 128 : index
    %3 = vector.load %arg18[%c0_5, %c128] : memref<2x2048xf32, #tpu.memory_space<vmem>>, vector<2x128xf32>
    tpu.vector_store %arg18[%c0_5, %c128], %2 {strides = array<i32>} : memref<2x2048xf32, #tpu.memory_space<vmem>>, vector<2x128xf32>,
    %c0_6 = arith.constant 0 : index
    %c0_7 = arith.constant 0 : index
    %4 = vector.load %arg4[%c0_6, %c0_7] : memref<2x128xf32, #tpu.memory_space<vmem>>, vector<2x128xf32>
    %c0_8 = arith.constant 0 : index
    %c256 = arith.constant 256 : index
    %5 = vector.load %arg18[%c0_8, %c256] : memref<2x2048xf32, #tpu.memory_space<vmem>>, vector<2x128xf32>
    tpu.vector_store %arg18[%c0_8, %c256], %4 {strides = array<i32>} : memref<2x2048xf32, #tpu.memory_space<vmem>>, vector<2x128xf32>,
    %c0_9 = arith.constant 0 : index
    %c0_10 = arith.constant 0 : index
    %6 = vector.load %arg5[%c0_9, %c0_10] : memref<2x128xf32, #tpu.memory_space<vmem>>, vector<2x128xf32>
    %c0_11 = arith.constant 0 : index
    %c384 = arith.constant 384 : index
    %7 = vector.load %arg18[%c0_11, %c384] : memref<2x2048xf32, #tpu.memory_space<vmem>>, vector<2x128xf32>
    tpu.vector_store %arg18[%c0_11, %c384], %6 {strides = array<i32>} : memref<2x2048xf32, #tpu.memory_space<vmem>>, vector<2x128xf32>,
    %c0_12 = arith.constant 0 : index
    %c0_13 = arith.constant 0 : index
    %8 = vector.load %arg6[%c0_12, %c0_13] : memref<2x128xf32, #tpu.memory_space<vmem>>, vector<2x128xf32>
    %c0_14 = arith.constant 0 : index
    %c512 = arith.constant 512 : index
    %9 = vector.load %arg18[%c0_14, %c512] : memref<2x2048xf32, #tpu.memory_space<vmem>>, vector<2x128xf32>
    tpu.vector_store %arg18[%c0_14, %c512], %8 {strides = array<i32>} : memref<2x2048xf32, #tpu.memory_space<vmem>>, vector<2x128xf32>,
    %c0_15 = arith.constant 0 : index
    %c0_16 = arith.constant 0 : index
    %10 = vector.load %arg7[%c0_15, %c0_16] : memref<2x128xf32, #tpu.memory_space<vmem>>, vector<2x128xf32>
    %c0_17 = arith.constant 0 : index
    %c640 = arith.constant 640 : index
    %11 = vector.load %arg18[%c0_17, %c640] : memref<2x2048xf32, #tpu.memory_space<vmem>>, vector<2x128xf32>
    tpu.vector_store %arg18[%c0_17, %c640], %10 {strides = array<i32>} : memref<2x2048xf32, #tpu.memory_space<vmem>>, vector<2x128xf32>,
    %c0_18 = arith.constant 0 : index
    %c0_19 = arith.constant 0 : index
    %12 = vector.load %arg8[%c0_18, %c0_19] : memref<2x128xf32, #tpu.memory_space<vmem>>, vector<2x128xf32>
    %c0_20 = arith.constant 0 : index
    %c768 = arith.constant 768 : index
    %13 = vector.load %arg18[%c0_20, %c768] : memref<2x2048xf32, #tpu.memory_space<vmem>>, vector<2x128xf32>
    tpu.vector_store %arg18[%c0_20, %c768], %12 {strides = array<i32>} : memref<2x2048xf32, #tpu.memory_space<vmem>>, vector<2x128xf32>,
    %c0_21 = arith.constant 0 : index
    %c0_22 = arith.constant 0 : index
    %14 = vector.load %arg9[%c0_21, %c0_22] : memref<2x128xf32, #tpu.memory_space<vmem>>, vector<2x128xf32>
    %c0_23 = arith.constant 0 : index
    %c896 = arith.constant 896 : index
    %15 = vector.load %arg18[%c0_23, %c896] : memref<2x2048xf32, #tpu.memory_space<vmem>>, vector<2x128xf32>
    tpu.vector_store %arg18[%c0_23, %c896], %14 {strides = array<i32>} : memref<2x2048xf32, #tpu.memory_space<vmem>>, vector<2x128xf32>,
    %c0_24 = arith.constant 0 : index
    %c0_25 = arith.constant 0 : index
    %16 = vector.load %arg10[%c0_24, %c0_25] : memref<2x128xf32, #tpu.memory_space<vmem>>, vector<2x128xf32>
    %c0_26 = arith.constant 0 : index
    %c1024 = arith.constant 1024 : index
    %17 = vector.load %arg18[%c0_26, %c1024] : memref<2x2048xf32, #tpu.memory_space<vmem>>, vector<2x128xf32>
    tpu.vector_store %arg18[%c0_26, %c1024], %16 {strides = array<i32>} : memref<2x2048xf32, #tpu.memory_space<vmem>>, vector<2x128xf32>,
    %c0_27 = arith.constant 0 : index
    %c0_28 = arith.constant 0 : index
    %18 = vector.load %arg11[%c0_27, %c0_28] : memref<2x128xf32, #tpu.memory_space<vmem>>, vector<2x128xf32>
    %c0_29 = arith.constant 0 : index
    %c1152 = arith.constant 1152 : index
    %19 = vector.load %arg18[%c0_29, %c1152] : memref<2x2048xf32, #tpu.memory_space<vmem>>, vector<2x128xf32>
    tpu.vector_store %arg18[%c0_29, %c1152], %18 {strides = array<i32>} : memref<2x2048xf32, #tpu.memory_space<vmem>>, vector<2x128xf32>,
    %c0_30 = arith.constant 0 : index
    %c0_31 = arith.constant 0 : index
    %20 = vector.load %arg12[%c0_30, %c0_31] : memref<2x128xf32, #tpu.memory_space<vmem>>, vector<2x128xf32>
    %c0_32 = arith.constant 0 : index
    %c1280 = arith.constant 1280 : index
    %21 = vector.load %arg18[%c0_32, %c1280] : memref<2x2048xf32, #tpu.memory_space<vmem>>, vector<2x128xf32>
    tpu.vector_store %arg18[%c0_32, %c1280], %20 {strides = array<i32>} : memref<2x2048xf32, #tpu.memory_space<vmem>>, vector<2x128xf32>,
    %c0_33 = arith.constant 0 : index
    %c0_34 = arith.constant 0 : index
    %22 = vector.load %arg13[%c0_33, %c0_34] : memref<2x128xf32, #tpu.memory_space<vmem>>, vector<2x128xf32>
    %c0_35 = arith.constant 0 : index
    %c1408 = arith.constant 1408 : index
    %23 = vector.load %arg18[%c0_35, %c1408] : memref<2x2048xf32, #tpu.memory_space<vmem>>, vector<2x128xf32>
    tpu.vector_store %arg18[%c0_35, %c1408], %22 {strides = array<i32>} : memref<2x2048xf32, #tpu.memory_space<vmem>>, vector<2x128xf32>,
    %c0_36 = arith.constant 0 : index
    %c0_37 = arith.constant 0 : index
    %24 = vector.load %arg14[%c0_36, %c0_37] : memref<2x128xf32, #tpu.memory_space<vmem>>, vector<2x128xf32>
    %c0_38 = arith.constant 0 : index
    %c1536 = arith.constant 1536 : index
    %25 = vector.load %arg18[%c0_38, %c1536] : memref<2x2048xf32, #tpu.memory_space<vmem>>, vector<2x128xf32>
    tpu.vector_store %arg18[%c0_38, %c1536], %24 {strides = array<i32>} : memref<2x2048xf32, #tpu.memory_space<vmem>>, vector<2x128xf32>,
    %c0_39 = arith.constant 0 : index
    %c0_40 = arith.constant 0 : index
    %26 = vector.load %arg15[%c0_39, %c0_40] : memref<2x128xf32, #tpu.memory_space<vmem>>, vector<2x128xf32>
    %c0_41 = arith.constant 0 : index
    %c1664 = arith.constant 1664 : index
    %27 = vector.load %arg18[%c0_41, %c1664] : memref<2x2048xf32, #tpu.memory_space<vmem>>, vector<2x128xf32>
    tpu.vector_store %arg18[%c0_41, %c1664], %26 {strides = array<i32>} : memref<2x2048xf32, #tpu.memory_space<vmem>>, vector<2x128xf32>,
    %c0_42 = arith.constant 0 : index
    %c0_43 = arith.constant 0 : index
    %28 = vector.load %arg16[%c0_42, %c0_43] : memref<2x128xf32, #tpu.memory_space<vmem>>, vector<2x128xf32>
    %c0_44 = arith.constant 0 : index
    %c1792 = arith.constant 1792 : index
    %29 = vector.load %arg18[%c0_44, %c1792] : memref<2x2048xf32, #tpu.memory_space<vmem>>, vector<2x128xf32>
    tpu.vector_store %arg18[%c0_44, %c1792], %28 {strides = array<i32>} : memref<2x2048xf32, #tpu.memory_space<vmem>>, vector<2x128xf32>,
    %c0_45 = arith.constant 0 : index
    %c0_46 = arith.constant 0 : index
    %30 = vector.load %arg17[%c0_45, %c0_46] : memref<2x128xf32, #tpu.memory_space<vmem>>, vector<2x128xf32>
    %c0_47 = arith.constant 0 : index
    %c1920 = arith.constant 1920 : index
    %31 = vector.load %arg18[%c0_47, %c1920] : memref<2x2048xf32, #tpu.memory_space<vmem>>, vector<2x128xf32>
    tpu.vector_store %arg18[%c0_47, %c1920], %30 {strides = array<i32>} : memref<2x2048xf32, #tpu.memory_space<vmem>>, vector<2x128xf32>,
    return
  }
  func.func @transform_0(%arg0: i32, %arg1: memref<32xi32, #tpu.memory_space<smem>>) -> (i32, i32) {
    %c16_i32 = arith.constant 16 : i32
    %0 = arith.muli %arg0, %c16_i32 : i32
    %c0_i32 = arith.constant 0 : i32
    %1 = arith.addi %0, %c0_i32 : i32
    %2 = arith.index_cast %1 : i32 to index
    %3 = memref.load %arg1[%2] : memref<32xi32, #tpu.memory_space<smem>>
    %c0_i32_0 = arith.constant 0 : i32
    %c0_i32_1 = arith.constant 0 : i32
    return %c0_i32_0, %3 : i32, i32
  }
  func.func @transform_1(%arg0: i32, %arg1: memref<32xi32, #tpu.memory_space<smem>>) -> (i32, i32) {
    %c16_i32 = arith.constant 16 : i32
    %0 = arith.muli %arg0, %c16_i32 : i32
    %c1_i32 = arith.constant 1 : i32
    %1 = arith.addi %0, %c1_i32 : i32
    %2 = arith.index_cast %1 : i32 to index
    %3 = memref.load %arg1[%2] : memref<32xi32, #tpu.memory_space<smem>>
    %c0_i32 = arith.constant 0 : i32
    %c0_i32_0 = arith.constant 0 : i32
    return %c0_i32, %3 : i32, i32
  }
  func.func @transform_2(%arg0: i32, %arg1: memref<32xi32, #tpu.memory_space<smem>>) -> (i32, i32) {
    %c16_i32 = arith.constant 16 : i32
    %0 = arith.muli %arg0, %c16_i32 : i32
    %c2_i32 = arith.constant 2 : i32
    %1 = arith.addi %0, %c2_i32 : i32
    %2 = arith.index_cast %1 : i32 to index
    %3 = memref.load %arg1[%2] : memref<32xi32, #tpu.memory_space<smem>>
    %c0_i32 = arith.constant 0 : i32
    %c0_i32_0 = arith.constant 0 : i32
    return %c0_i32, %3 : i32, i32
  }
  func.func @transform_3(%arg0: i32, %arg1: memref<32xi32, #tpu.memory_space<smem>>) -> (i32, i32) {
    %c16_i32 = arith.constant 16 : i32
    %0 = arith.muli %arg0, %c16_i32 : i32
    %c3_i32 = arith.constant 3 : i32
    %1 = arith.addi %0, %c3_i32 : i32
    %2 = arith.index_cast %1 : i32 to index
    %3 = memref.load %arg1[%2] : memref<32xi32, #tpu.memory_space<smem>>
    %c0_i32 = arith.constant 0 : i32
    %c0_i32_0 = arith.constant 0 : i32
    return %c0_i32, %3 : i32, i32
  }
  func.func @transform_4(%arg0: i32, %arg1: memref<32xi32, #tpu.memory_space<smem>>) -> (i32, i32) {
    %c16_i32 = arith.constant 16 : i32
    %0 = arith.muli %arg0, %c16_i32 : i32
    %c4_i32 = arith.constant 4 : i32
    %1 = arith.addi %0, %c4_i32 : i32
    %2 = arith.index_cast %1 : i32 to index
    %3 = memref.load %arg1[%2] : memref<32xi32, #tpu.memory_space<smem>>
    %c0_i32 = arith.constant 0 : i32
    %c0_i32_0 = arith.constant 0 : i32
    return %c0_i32, %3 : i32, i32
  }
  func.func @transform_5(%arg0: i32, %arg1: memref<32xi32, #tpu.memory_space<smem>>) -> (i32, i32) {
    %c16_i32 = arith.constant 16 : i32
    %0 = arith.muli %arg0, %c16_i32 : i32
    %c5_i32 = arith.constant 5 : i32
    %1 = arith.addi %0, %c5_i32 : i32
    %2 = arith.index_cast %1 : i32 to index
    %3 = memref.load %arg1[%2] : memref<32xi32, #tpu.memory_space<smem>>
    %c0_i32 = arith.constant 0 : i32
    %c0_i32_0 = arith.constant 0 : i32
    return %c0_i32, %3 : i32, i32
  }
  func.func @transform_6(%arg0: i32, %arg1: memref<32xi32, #tpu.memory_space<smem>>) -> (i32, i32) {
    %c16_i32 = arith.constant 16 : i32
    %0 = arith.muli %arg0, %c16_i32 : i32
    %c6_i32 = arith.constant 6 : i32
    %1 = arith.addi %0, %c6_i32 : i32
    %2 = arith.index_cast %1 : i32 to index
    %3 = memref.load %arg1[%2] : memref<32xi32, #tpu.memory_space<smem>>
    %c0_i32 = arith.constant 0 : i32
    %c0_i32_0 = arith.constant 0 : i32
    return %c0_i32, %3 : i32, i32
  }
  func.func @transform_7(%arg0: i32, %arg1: memref<32xi32, #tpu.memory_space<smem>>) -> (i32, i32) {
    %c16_i32 = arith.constant 16 : i32
    %0 = arith.muli %arg0, %c16_i32 : i32
    %c7_i32 = arith.constant 7 : i32
    %1 = arith.addi %0, %c7_i32 : i32
    %2 = arith.index_cast %1 : i32 to index
    %3 = memref.load %arg1[%2] : memref<32xi32, #tpu.memory_space<smem>>
    %c0_i32 = arith.constant 0 : i32
    %c0_i32_0 = arith.constant 0 : i32
    return %c0_i32, %3 : i32, i32
  }
  func.func @transform_8(%arg0: i32, %arg1: memref<32xi32, #tpu.memory_space<smem>>) -> (i32, i32) {
    %c16_i32 = arith.constant 16 : i32
    %0 = arith.muli %arg0, %c16_i32 : i32
    %c8_i32 = arith.constant 8 : i32
    %1 = arith.addi %0, %c8_i32 : i32
    %2 = arith.index_cast %1 : i32 to index
    %3 = memref.load %arg1[%2] : memref<32xi32, #tpu.memory_space<smem>>
    %c0_i32 = arith.constant 0 : i32
    %c0_i32_0 = arith.constant 0 : i32
    return %c0_i32, %3 : i32, i32
  }
  func.func @transform_9(%arg0: i32, %arg1: memref<32xi32, #tpu.memory_space<smem>>) -> (i32, i32) {
    %c16_i32 = arith.constant 16 : i32
    %0 = arith.muli %arg0, %c16_i32 : i32
    %c9_i32 = arith.constant 9 : i32
    %1 = arith.addi %0, %c9_i32 : i32
    %2 = arith.index_cast %1 : i32 to index
    %3 = memref.load %arg1[%2] : memref<32xi32, #tpu.memory_space<smem>>
    %c0_i32 = arith.constant 0 : i32
    %c0_i32_0 = arith.constant 0 : i32
    return %c0_i32, %3 : i32, i32
  }
  func.func @transform_10(%arg0: i32, %arg1: memref<32xi32, #tpu.memory_space<smem>>) -> (i32, i32) {
    %c16_i32 = arith.constant 16 : i32
    %0 = arith.muli %arg0, %c16_i32 : i32
    %c10_i32 = arith.constant 10 : i32
    %1 = arith.addi %0, %c10_i32 : i32
    %2 = arith.index_cast %1 : i32 to index
    %3 = memref.load %arg1[%2] : memref<32xi32, #tpu.memory_space<smem>>
    %c0_i32 = arith.constant 0 : i32
    %c0_i32_0 = arith.constant 0 : i32
    return %c0_i32, %3 : i32, i32
  }
  func.func @transform_11(%arg0: i32, %arg1: memref<32xi32, #tpu.memory_space<smem>>) -> (i32, i32) {
    %c16_i32 = arith.constant 16 : i32
    %0 = arith.muli %arg0, %c16_i32 : i32
    %c11_i32 = arith.constant 11 : i32
    %1 = arith.addi %0, %c11_i32 : i32
    %2 = arith.index_cast %1 : i32 to index
    %3 = memref.load %arg1[%2] : memref<32xi32, #tpu.memory_space<smem>>
    %c0_i32 = arith.constant 0 : i32
    %c0_i32_0 = arith.constant 0 : i32
    return %c0_i32, %3 : i32, i32
  }
  func.func @transform_12(%arg0: i32, %arg1: memref<32xi32, #tpu.memory_space<smem>>) -> (i32, i32) {
    %c16_i32 = arith.constant 16 : i32
    %0 = arith.muli %arg0, %c16_i32 : i32
    %c12_i32 = arith.constant 12 : i32
    %1 = arith.addi %0, %c12_i32 : i32
    %2 = arith.index_cast %1 : i32 to index
    %3 = memref.load %arg1[%2] : memref<32xi32, #tpu.memory_space<smem>>
    %c0_i32 = arith.constant 0 : i32
    %c0_i32_0 = arith.constant 0 : i32
    return %c0_i32, %3 : i32, i32
  }
  func.func @transform_13(%arg0: i32, %arg1: memref<32xi32, #tpu.memory_space<smem>>) -> (i32, i32) {
    %c16_i32 = arith.constant 16 : i32
    %0 = arith.muli %arg0, %c16_i32 : i32
    %c13_i32 = arith.constant 13 : i32
    %1 = arith.addi %0, %c13_i32 : i32
    %2 = arith.index_cast %1 : i32 to index
    %3 = memref.load %arg1[%2] : memref<32xi32, #tpu.memory_space<smem>>
    %c0_i32 = arith.constant 0 : i32
    %c0_i32_0 = arith.constant 0 : i32
    return %c0_i32, %3 : i32, i32
  }
  func.func @transform_14(%arg0: i32, %arg1: memref<32xi32, #tpu.memory_space<smem>>) -> (i32, i32) {
    %c16_i32 = arith.constant 16 : i32
    %0 = arith.muli %arg0, %c16_i32 : i32
    %c14_i32 = arith.constant 14 : i32
    %1 = arith.addi %0, %c14_i32 : i32
    %2 = arith.index_cast %1 : i32 to index
    %3 = memref.load %arg1[%2] : memref<32xi32, #tpu.memory_space<smem>>
    %c0_i32 = arith.constant 0 : i32
    %c0_i32_0 = arith.constant 0 : i32
    return %c0_i32, %3 : i32, i32
  }
  func.func @transform_15(%arg0: i32, %arg1: memref<32xi32, #tpu.memory_space<smem>>) -> (i32, i32) {
    %c16_i32 = arith.constant 16 : i32
    %0 = arith.muli %arg0, %c16_i32 : i32
    %c15_i32 = arith.constant 15 : i32
    %1 = arith.addi %0, %c15_i32 : i32
    %2 = arith.index_cast %1 : i32 to index
    %3 = memref.load %arg1[%2] : memref<32xi32, #tpu.memory_space<smem>>
    %c0_i32 = arith.constant 0 : i32
    %c0_i32_0 = arith.constant 0 : i32
    return %c0_i32, %3 : i32, i32
  }
  func.func @transform_16(%arg0: i32, %arg1: memref<32xi32, #tpu.memory_space<smem>>) -> (i32, i32) {
    %c0_i32 = arith.constant 0 : i32
    %c0_i32_0 = arith.constant 0 : i32
    return %c0_i32, %arg0 : i32, i32
  }
}

</mosaic_0001>

<bundles_post_ra>
// kernel: tpu_custom_call.1
= control target key start
LH: loop header
LB: loop body
LE: loop exit
PB: predicated region body
PF: predicated region fallthrough
CT: control target
= control target key end

     0   :  { %s5151_s0 = inlined_call_operand.hbm [shape: s32[32], index: 0, kind: input, shape index: {}]   ;;  %s5152_s1 = inlined_call_operand.hbm [shape: f32[2,4096], index: 1, kind: input, shape index: {}]   ;;  %s5153_s2 = inlined_call_operand.hbm [shape: f32[2,4096], index: 2, kind: input, shape index: {}]   ;;  %s5154_s3 = inlined_call_operand.hbm [shape: f32[2,4096], index: 3, kind: input, shape index: {}]   ;;  %s5155_s4 = inlined_call_operand.hbm [shape: f32[2,4096], index: 4, kind: input, shape index: {}]   ;;  %s5156_s5 = inlined_call_operand.hbm [shape: f32[2,4096], index: 5, kind: input, shape index: {}]   ;;  %s5157_s6 = inlined_call_operand.hbm [shape: f32[2,4096], index: 6, kind: input, shape index: {}]   ;;  %s5158_s7 = inlined_call_operand.hbm [shape: f32[2,4096], index: 7, kind: input, shape index: {}]   ;;  %s5159_s8 = inlined_call_operand.hbm [shape: f32[2,4096], index: 8, kind: input, shape index: {}]   ;;  %s5160_s9 = inlined_call_operand.hbm [shape: f32[2,4096], index: 9, kind: input, shape index: {}]   ;;  %s5161_s10 = inlined_call_operand.hbm [shape: f32[2,4096], index: 10, kind: input, shape index: {}]   ;;  %s5162_s11 = inlined_call_operand.hbm [shape: f32[2,4096], index: 11, kind: input, shape index: {}]   ;;  %s5163_s12 = inlined_call_operand.hbm [shape: f32[2,4096], index: 12, kind: input, shape index: {}]   ;;  %s5164_s13 = inlined_call_operand.hbm [shape: f32[2,4096], index: 13, kind: input, shape index: {}]   ;;  %s5165_s14 = inlined_call_operand.hbm [shape: f32[2,4096], index: 14, kind: input, shape index: {}]   ;;  %s5166_s15 = inlined_call_operand.hbm [shape: f32[2,4096], index: 15, kind: input, shape index: {}]   ;;  %s5167_s16 = inlined_call_operand.hbm [shape: f32[2,4096], index: 16, kind: input, shape index: {}]   ;;  %s5168_s17 = inlined_call_operand.hbm [shape: f32[2,4096], index: 17, kind: output, shape index: {}]  }
   0x1   :  { %5361 = sst [smem:[#allocation145_spill]] %s5151_s0 }
   0x2   :  { %5362 = sst [smem:[#allocation146_spill]] %s5152_s1  ;;  %s5379_s26 = sld [smem:[#allocation145_spill]] }
   0x3   :  { %5363 = sst [smem:[#allocation147_spill]] %s5153_s2 }
   0x4   :  { %5364 = sst [smem:[#allocation148_spill]] %s5154_s3 }
   0x5   :  { %5365 = sst [smem:[#allocation149_spill]] %s5155_s4 }
   0x6   :  { %5366 = sst [smem:[#allocation150_spill]] %s5156_s5 }
   0x7   :  { %5367 = sst [smem:[#allocation151_spill]] %s5157_s6 }
   0x8   :  { %5368 = sst [smem:[#allocation152_spill]] %s5158_s7 }
   0x9   :  { %5369 = sst [smem:[#allocation153_spill]] %s5159_s8 }
   0xa   :  { %5370 = sst [smem:[#allocation154_spill]] %s5160_s9 }
   0xb   :  { %5371 = sst [smem:[#allocation155_spill]] %s5161_s10 }
   0xc   :  { %5372 = sst [smem:[#allocation156_spill]] %s5162_s11  ;;  %s2333_s11 = scalar_lea.hbm %s5379_s26, 16 }
   0xd   :  { %5373 = sst [smem:[#allocation157_spill]] %s5163_s12  ;;  %p2334_p0 = scmp.ne.s32.totalorder %s5379_s26, %s2333_s11 }
   0xe   :  { %5374 = sst [smem:[#allocation158_spill]] %s5164_s13  ;;  %p2337_p1 = scmp.lt.u32.totalorder %s2333_s11, %s5379_s26 }
   0xf   :  { %5375 = sst [smem:[#allocation159_spill]] %s5165_s14 }
  0x10   :  { %5376 = sst [smem:[#allocation160_spill]] %s5166_s15  ;;  %p2339_p2 = pnand %p2337_p1, %p2334_p0 }
  0x11   :  { %5377 = sst [smem:[#allocation161_spill]] %s5167_s16 }
  0x12   :  { %5378 = sst [smem:[#allocation162_spill]] %s5168_s17 }
  0x13   :  { %2342 = shalt.err (!%p2339_p2)  }
  0x14   :  { %s3305_s30 = smov [#allocation3]  }
  0x15   :  { %23 = dma.hbm_to_smem %s5379_s26, 16, %s3305_s30, [#allocation2] }
  0x16   :  { %3027 = dma.done.wait [#allocation2], 16 }
  0x17   :  { %3028 = vsyncadd [#allocation2], 4294967280 }
  0x18   :  { %25 = sfence }
  0x19   :  { %26 = vsyncpa [#allocation5], 0 }
  0x1a   :  { %28 = vsyncpa [#allocation5 + $0x1], 0 }
  0x1b   :  { %29 = vsyncpa [#allocation8], 0 }
  0x1c   :  { %31 = vsyncpa [#allocation8 + $0x1], 0 }
  0x1d   :  { %32 = vsyncpa [#allocation11], 0 }
  0x1e   :  { %34 = vsyncpa [#allocation11 + $0x1], 0 }
  0x1f   :  { %35 = vsyncpa [#allocation14], 0 }
  0x20   :  { %37 = vsyncpa [#allocation14 + $0x1], 0 }
  0x21   :  { %38 = vsyncpa [#allocation17], 0 }
  0x22   :  { %40 = vsyncpa [#allocation17 + $0x1], 0 }
  0x23   :  { %41 = vsyncpa [#allocation20], 0 }
  0x24   :  { %43 = vsyncpa [#allocation20 + $0x1], 0 }
  0x25   :  { %44 = vsyncpa [#allocation23], 0 }
  0x26   :  { %46 = vsyncpa [#allocation23 + $0x1], 0 }
  0x27   :  { %47 = vsyncpa [#allocation26], 0 }
  0x28   :  { %49 = vsyncpa [#allocation26 + $0x1], 0 }
  0x29   :  { %50 = vsyncpa [#allocation29], 0 }
  0x2a   :  { %52 = vsyncpa [#allocation29 + $0x1], 0 }
  0x2b   :  { %53 = vsyncpa [#allocation6], 0 }
  0x2c   :  { %55 = vsyncpa [#allocation6 + $0x1], 0  ;;  %s3425_s11 = smov 0   ;;  %s3427_s1 = smov 0  }
  0x2d   :  { %s3429_s20 = smov 0   ;;  %s3431_s21 = smov 0  }
  0x2e   :  { %5380 = sst [smem:[#allocation65_spill]] %s3431_s21  ;;  %s3433_s22 = smov 0  }
  0x2f   :  { %s3435_s23 = smov 0   ;;  %s3437_s24 = smov 0  }
  0x30   :  { %5381 = sst [smem:[#allocation66_spill]] %s3437_s24  ;;  %s3439_s25 = smov 0  }
  0x31   :  { %s3441_s26 = smov 0   ;;  %s3443_s27 = smov 0  }
  0x32   :  { %5382 = sst [smem:[#allocation67_spill]] %s3441_s26  ;;  %s3445_s28 = smov 0  }
  0x33   :  { %5383 = sst [smem:[#allocation68_spill]] %s3443_s27  ;;  %s3447_s29 = smov 0  }
  0x34   :  { %5384 = sst [smem:[#allocation69_spill]] %s3445_s28  ;;  %s3449_s0 = smov 0  }
  0x35   :  { %5385 = sst [smem:[#allocation70_spill]] %s3449_s0  ;;  %s3451_s30 = smov 0  }
  0x36   :  { %5386 = sst [smem:[#allocation71_spill]] %s3451_s30  ;;  %s3453_s18 = smov 0  }
  0x37   :  { %5387 = sst [smem:[#allocation72_spill]] %s3453_s18  ;;  %s3455_s19 = smov 0  }
  0x38   :  { %s3457_s17 = smov 0   ;;  %s3459_s16 = smov 0  }
  0x39   :  { %5388 = sst [smem:[#allocation73_spill]] %s3457_s17  ;;  %s3461_s15 = smov 0  }
  0x3a   :  { %5389 = sst [smem:[#allocation74_spill]] %s3459_s16  ;;  %s3463_s13 = smov 0  }
  0x3b   :  { %5390 = sst [smem:[#allocation75_spill]] %s3461_s15  ;;  %s3465_s9 = smov 0  }
  0x3c   :  { %5391 = sst [smem:[#allocation76_spill]] %s3463_s13  ;;  %s3467_s7 = smov 0  }
  0x3d   :  { %5392 = sst [smem:[#allocation77_spill]] %s3465_s9  ;;  %s3469_s5 = smov 0  }
  0x3e   :  { %5393 = sst [smem:[#allocation78_spill]] %s3467_s7  ;;  %s3471_s3 = smov 0  }
  0x3f   :  { %5394 = sst [smem:[#allocation79_spill]] %s3469_s5  ;;  %s3473_s14 = smov 0  }
  0x40   :  { %5395 = sst [smem:[#allocation80_spill]] %s3471_s3  ;;  %s3475_s12 = smov 0  }
  0x41   :  { %5396 = sst [smem:[#allocation81_spill]] %s3473_s14  ;;  %s3477_s10 = smov 0  }
  0x42   :  { %5397 = sst [smem:[#allocation82_spill]] %s3475_s12  ;;  %s3479_s8 = smov 0  }
  0x43   :  { %5398 = sst [smem:[#allocation83_spill]] %s3477_s10  ;;  %s3481_s6 = smov 0  }
  0x44   :  { %5399 = sst [smem:[#allocation84_spill]] %s3479_s8  ;;  %s3483_s4 = smov 0  }
  0x45   :  { %5400 = sst [smem:[#allocation85_spill]] %s3481_s6  ;;  %s3485_s2 = smov 0  }
  0x46   :  { %5401 = sst [smem:[#allocation86_spill]] %s3483_s4  ;;  %s3487_s9 = smov 0  }
  0x47   :  { %5402 = sst [smem:[#allocation87_spill]] %s3485_s2  ;;  %s3489_s7 = smov 0  }
  0x48   :  { %5403 = sst [smem:[#allocation88_spill]] %s3487_s9  ;;  %s3491_s5 = smov 0  }
  0x49   :  { %5404 = sst [smem:[#allocation89_spill]] %s3489_s7  ;;  %s3493_s3 = smov 0  }
  0x4a   :  { %5405 = sst [smem:[#allocation90_spill]] %s3491_s5  ;;  %s3495_s14 = smov 0  }
  0x4b   :  { %5406 = sst [smem:[#allocation91_spill]] %s3493_s3  ;;  %s3497_s12 = smov 0  }
  0x4c   :  { %5407 = sst [smem:[#allocation92_spill]] %s3495_s14  ;;  %s3499_s10 = smov 0  }
  0x4d   :  { %5408 = sst [smem:[#allocation93_spill]] %s3497_s12  ;;  %s3501_s8 = smov 0  }
  0x4e   :  { %5409 = sst [smem:[#allocation94_spill]] %s3499_s10  ;;  %s3503_s6 = smov 0  }
  0x4f   :  { %5410 = sst [smem:[#allocation95_spill]] %s3501_s8  ;;  %s3505_s4 = smov 0  }
  0x50   :  { %5411 = sst [smem:[#allocation96_spill]] %s3503_s6  ;;  %s3507_s2 = smov 0  }
  0x51   :  { %5412 = sst [smem:[#allocation97_spill]] %s3505_s4  ;;  %s3509_s9 = smov 0  }
  0x52   :  { %5413 = sst [smem:[#allocation98_spill]] %s3507_s2  ;;  %s3511_s7 = smov 0  }
  0x53   :  { %5414 = sst [smem:[#allocation99_spill]] %s3511_s7  ;;  %s3513_s5 = smov 0  }
  0x54   :  { %s3515_s3 = smov 0   ;;  %s3517_s14 = smov 0  }
  0x55   :  { %s3519_s12 = smov 0   ;;  %s3521_s10 = smov 0  }
  0x56   :  { %5415 = sst [smem:[#allocation100_spill]] %s3519_s12  ;;  %s3523_s8 = smov 0  }
  0x57   :  { %5416 = sst [smem:[#allocation101_spill]] %s3521_s10  ;;  %s3525_s6 = smov 0  }
  0x58   :  { %5417 = sst [smem:[#allocation102_spill]] %s3523_s8  ;;  %s3527_s4 = smov 0  }
  0x59   :  { %5418 = sst [smem:[#allocation103_spill]] %s3525_s6 }
  0x5a   :  { %5419 = sst [smem:[#allocation104_spill]] %s3527_s4 }
  0x5b LB: > { %s5460_s21 = sld [smem:[#allocation65_spill]]  ;;  %s5461_s24 = sld [smem:[#allocation66_spill]]  ;;  %s3283_s14 = sphi %s3517_s14, %s5925_s14   ;;  %s3279_s3 = sphi %s3515_s3, %s5923_s3   ;;  %s3275_s5 = sphi %s3513_s5, %s5943_s5   ;;  %s3267_s9 = sphi %s3509_s9, %s5917_s9   ;;  %s3159_s19 = sphi %s3455_s19, %s5894_s19   ;;  %s3143_s29 = sphi %s3447_s29, %s5886_s29   ;;  %s3127_s25 = sphi %s3439_s25, %s5860_s25   ;;  %s3119_s23 = sphi %s3435_s23, %s5875_s23   ;;  %s3115_s22 = sphi %s3433_s22, %s5857_s22   ;;  %s3107_s20 = sphi %s3429_s20, %s5855_s20   ;;  %s3103_s1 = sphi %s3427_s1, %s5854_s1   ;;  %s3099_s11 = sphi %s3425_s11, %s5853_s11  }
  0x5c   : > { %s5462_s26 = sld [smem:[#allocation67_spill]]  ;;  %s5463_s27 = sld [smem:[#allocation68_spill]] }
  0x5d   : > { %s5464_s28 = sld [smem:[#allocation69_spill]]  ;;  %s5465_s0 = sld [smem:[#allocation70_spill]] }
  0x5e   : > { %s5466_s30 = sld [smem:[#allocation71_spill]]  ;;  %s5467_s18 = sld [smem:[#allocation72_spill]] }
  0x5f   : > { %5468 = sst [smem:[#allocation65_spill]] %s3099_s11  ;;  %s5471_s16 = sld [smem:[#allocation74_spill]] }
  0x60   : > { %s5469_s17 = sld [smem:[#allocation73_spill]]  ;;  %5470 = sst [smem:[#allocation66_spill]] %s3103_s1 }
  0x61   : > { %5472 = sst [smem:[#allocation67_spill]] %s3107_s20  ;;  %s5475_s13 = sld [smem:[#allocation76_spill]] }
  0x62   : > { %s5473_s15 = sld [smem:[#allocation75_spill]]  ;;  %5474 = sst [smem:[#allocation68_spill]] %s5460_s21 }
  0x63   : > { %5476 = sst [smem:[#allocation69_spill]] %s3115_s22  ;;  %s5479_s6 = sld [smem:[#allocation78_spill]] }
  0x64   : > { %s5477_s4 = sld [smem:[#allocation77_spill]]  ;;  %5478 = sst [smem:[#allocation70_spill]] %s3119_s23 }
  0x65   : > { %5480 = sst [smem:[#allocation71_spill]] %s5461_s24  ;;  %s5483_s11 = sld [smem:[#allocation80_spill]] }
  0x66   : > { %s5481_s8 = sld [smem:[#allocation79_spill]]  ;;  %5482 = sst [smem:[#allocation72_spill]] %s3127_s25 }
  0x67   : > { %5484 = sst [smem:[#allocation73_spill]] %s5462_s26  ;;  %s5487_s20 = sld [smem:[#allocation82_spill]] }
  0x68   : > { %s5485_s1 = sld [smem:[#allocation81_spill]]  ;;  %5486 = sst [smem:[#allocation74_spill]] %s5463_s27 }
  0x69   : > { %5488 = sst [smem:[#allocation75_spill]] %s5464_s28  ;;  %s5491_s22 = sld [smem:[#allocation84_spill]] }
  0x6a   : > { %s5489_s21 = sld [smem:[#allocation83_spill]]  ;;  %5490 = sst [smem:[#allocation76_spill]] %s3143_s29 }
  0x6b   : > { %5492 = sst [smem:[#allocation77_spill]] %s5465_s0  ;;  %s5495_s24 = sld [smem:[#allocation86_spill]] }
  0x6c   : > { %s5493_s23 = sld [smem:[#allocation85_spill]]  ;;  %5494 = sst [smem:[#allocation78_spill]] %s5466_s30 }
  0x6d   : > { %5496 = sst [smem:[#allocation79_spill]] %s5467_s18  ;;  %s5499_s26 = sld [smem:[#allocation88_spill]] }
  0x6e   : > { %s5497_s25 = sld [smem:[#allocation87_spill]]  ;;  %5498 = sst [smem:[#allocation80_spill]] %s3159_s19 }
  0x6f   : > { %5500 = sst [smem:[#allocation81_spill]] %s5469_s17  ;;  %s5503_s28 = sld [smem:[#allocation90_spill]] }
  0x70   : > { %s5501_s27 = sld [smem:[#allocation89_spill]]  ;;  %5502 = sst [smem:[#allocation82_spill]] %s5471_s16 }
  0x71   : > { %5504 = sst [smem:[#allocation83_spill]] %s5473_s15  ;;  %s5507_s0 = sld [smem:[#allocation92_spill]] }
  0x72   : > { %s5505_s29 = sld [smem:[#allocation91_spill]]  ;;  %5506 = sst [smem:[#allocation84_spill]] %s5475_s13 }
  0x73   : > { %5508 = sst [smem:[#allocation85_spill]] %s5477_s4  ;;  %s5511_s18 = sld [smem:[#allocation94_spill]] }
  0x74   : > { %s5509_s30 = sld [smem:[#allocation93_spill]]  ;;  %5510 = sst [smem:[#allocation86_spill]] %s5479_s6 }
  0x75   : > { %5512 = sst [smem:[#allocation87_spill]] %s5481_s8  ;;  %s5515_s10 = sld [smem:[#allocation96_spill]] }
  0x76   : > { %s5513_s19 = sld [smem:[#allocation95_spill]]  ;;  %5514 = sst [smem:[#allocation88_spill]] %s5483_s11 }
  0x77   : > { %5516 = sst [smem:[#allocation96_spill]] %s5485_s1  ;;  %s5517_s16 = sld [smem:[#allocation97_spill]] }
  0x78   : > { %5518 = sst [smem:[#allocation97_spill]] %s5487_s20  ;;  %s5519_s2 = sld [smem:[#allocation98_spill]] }
  0x79   : > { %5520 = sst [smem:[#allocation98_spill]] %s5489_s21  ;;  %s5522_s7 = sld [smem:[#allocation99_spill]] }
  0x7a   : > { %5521 = sst [smem:[#allocation89_spill]] %s5491_s22  ;;  %s5526_s12 = sld [smem:[#allocation100_spill]] }
  0x7b   : > { %5523 = sst [smem:[#allocation99_spill]] %s5493_s23  ;;  %s5528_s17 = smov %s5501_s27 }
  0x7c   : > { %5524 = sst [smem:[#allocation90_spill]] %s5495_s24  ;;  %s5529_s11 = sld [smem:[#allocation101_spill]] }
  0x7d   : > { %5525 = sst [smem:[#allocation91_spill]] %s5499_s26  ;;  %s5530_s20 = sld [smem:[#allocation102_spill]] }
  0x7e   : > { %5527 = sst [smem:[#allocation100_spill]] %s5501_s27  ;;  %s5532_s15 = smov %s5505_s29 }
  0x7f   : > { %5531 = sst [smem:[#allocation102_spill]] %s5505_s29  ;;  %s5533_s21 = sld [smem:[#allocation103_spill]] }
  0x80   : > { %5534 = sst [smem:[#allocation103_spill]] %s5507_s0  ;;  %s5535_s13 = smov %s5507_s0 }
  0x81   : > { %s5536_s23 = sld [smem:[#allocation104_spill]]  ;;  %5538 = sst [smem:[#allocation101_spill]] %s5513_s19 }
  0x82   : > { %5537 = sst [smem:[#allocation104_spill]] %s5511_s18  ;;  %s5541_s8 = smov %s5517_s16 }
  0x83   : > { %5539 = sst [smem:[#allocation92_spill]] %s5515_s10  ;;  %s5548_s4 = smov %s5530_s20 }
  0x84   : > { %5540 = sst [smem:[#allocation95_spill]] %s5517_s16  ;;  %p85_p5 = scmp.ne.s32.totalorder %s5548_s4, %s5529_s11 }
  0x85   : > { %5542 = sst [smem:[#allocation93_spill]] %s5519_s2  ;;  %s5550_s6 = smov %s5533_s21 }
  0x86   : > { %5543 = sst [smem:[#allocation94_spill]] %s5522_s7  ;;  %s72_s19 = sadd.s32 1, %s5550_s6 }
  0x87   : > { %5544 = sst [smem:[#allocation105_spill]] %s3275_s5  ;;  %s3684_s16 = sadd.s32 4294967295, %s5536_s23  }
  0x88   : > { %5545 = sst [smem:[#allocation106_spill]] %s3283_s14  ;;  %s3688_s26 = sadd.s32 1, %s5536_s23  }
  0x89   : > { %5546 = sst [smem:[#allocation107_spill]] %s5526_s12  ;;  %s3691_s27 = sshll.u32 %s5536_s23, 4 }
  0x8a   : > { %5547 = sst [smem:[#allocation108_spill]] %s5530_s20  ;;  %s3695_s0 = sadd.s32 16, %s3691_s27 }
  0x8b   : > { %5549 = sst [smem:[#allocation109_spill]] %s5533_s21  ;;  %p79_p3 = scmp.ne.s32.totalorder %s5550_s6, %s5548_s4 }
  0x8c   : > { %5551 = sst [smem:[#allocation110_spill]] %s3688_s26  ;;  %p5241_p4 = scmp.eq.s32.totalorder %s5536_s23, 0 }
  0x8d   : > { %s66_s29 = sld [smem:[#allocation3 + %s3691_s27]]  ;;  %p5233_p6 = scmp.eq.s32.totalorder %s3684_s16, 0 }
  0x8e   : > { %s68_s18 = sld [smem:[#allocation3 + %s3695_s0]]  ;;  %p3706_p7 = por %p5241_p4, %p79_p3 }
  0x8f   : > { %s5221_s21 = sadd.s32 1, %s3691_s27  ;;  %p3713_p8 = por %p5233_p6, %p85_p5 }
  0x90   : > { %s5552_s20 = scalar_select %p3706_p7, 1, 0 }
  0x91   : > { %s5554_s26 = scalar_select %p3713_p8, 1, 0 }
  0x92   : > { %5553 = sst [smem:[#allocation111_spill]] %s5552_s20  ;;  %s99_s10 = sadd.s32 1, %s3695_s0 }
  0x93   : > { %5555 = sst [smem:[#allocation112_spill]] %s5554_s26  ;;  %s104_s11 = sadd.s32 1, %s5526_s12 }
  0x94   : > { %s97_s24 = sld [smem:[#allocation3 + %s5221_s21]]  ;;  %s69_s4 = ssub.s32 %s66_s29, %s68_s18 }
  0x95   : > { %s100_s1 = sld [smem:[#allocation3 + %s99_s10]]  ;;  %p70_p9 = scmp.eq.s32.totalorder %s69_s4, 0 }
  0x96   : > { %p111_p10 = scmp.ne.s32.totalorder %s5526_s12, %s3283_s14  ;;  %p117_p11 = scmp.ne.s32.totalorder %s3283_s14, %s3279_s3 }
  0x97   : > { %s5222_s20 = sadd.s32 2, %s3691_s27  ;;  %s131_s29 = sadd.s32 2, %s3695_s0 }
  0x98   : > { %s3727_s26 = scalar_select %p70_p9, %s5550_s6, %s72_s19  }
  0x99   : > { %p3731_p12 = por %p111_p10, %p5241_p4  ;;  %p3737_p13 = por %p117_p11, %p5233_p6 }
  0x9a   : > { %5556 = sst [smem:[#allocation113_spill]] %s3727_s26  ;;  %s136_s19 = sadd.s32 1, %s3275_s5 }
  0x9b   : > { %s5558_s10 = scalar_select %p3737_p13, 1, 0 }
  0x9c   : > { %s129_s4 = sld [smem:[#allocation3 + %s5222_s20]]  ;;  %s101_s3 = ssub.s32 %s97_s24, %s100_s1 }
  0x9d   : > { %5559 = sst [smem:[#allocation114_spill]] %s5558_s10  ;;  %p102_p0 = scmp.eq.s32.totalorder %s101_s3, 0 }
  0x9e   : > { %s132_s18 = sld [smem:[#allocation3 + %s131_s29]]  ;;  %p143_p1 = scmp.ne.s32.totalorder %s3275_s5, %s5522_s7 }
  0x9f   : > { %s5560_s26 = sld [smem:[#allocation92_spill]]  ;;  %p149_p2 = scmp.ne.s32.totalorder %s5522_s7, %s3267_s9 }
  0xa0   : > { %s3750_s21 = scalar_select %p102_p0, %s5526_s12, %s104_s11  }
  0xa1   : > { %p3754_p3 = por %p143_p1, %p5241_p4  ;;  %p3760_p5 = por %p149_p2, %p5233_p6 }
  0xa2   : > { %5561 = sst [smem:[#allocation92_spill]] %s3750_s21  ;;  %s5227_s24 = sadd.s32 3, %s3691_s27 }
  0xa3   : > { %s5562_s20 = scalar_select %p3754_p3, 1, 0 }
  0xa4   : > { %s5564_s1 = scalar_select %p3760_p5, 1, 0 }
  0xa5   : > { %5563 = sst [smem:[#allocation115_spill]] %s5562_s20  ;;  %s163_s29 = sadd.s32 3, %s3695_s0 }
  0xa6   : > { %5565 = sst [smem:[#allocation116_spill]] %s5564_s1  ;;  %s133_s3 = ssub.s32 %s129_s4, %s132_s18 }
  0xa7   : > { %s5566_s9 = sld [smem:[#allocation101_spill]]  ;;  %s5567_s11 = sld [smem:[#allocation104_spill]] }
  0xa8   : > { %s161_s7 = sld [smem:[#allocation3 + %s5227_s24]]  ;;  %p134_p9 = scmp.eq.s32.totalorder %s133_s3, 0 }
  0xa9   : > { %s164_s21 = sld [smem:[#allocation3 + %s163_s29]]  ;;  %s168_s10 = sadd.s32 1, %s5519_s2 }
  0xaa   : > { %p175_p10 = scmp.ne.s32.totalorder %s5519_s2, %s5541_s8  ;;  %p181_p0 = scmp.ne.s32.totalorder %s5541_s8, %s5560_s26 }
  0xab   : > { %s3772_s14 = scalar_select %p134_p9, %s3275_s5, %s136_s19  }
  0xac   : > { %p3776_p11 = por %p175_p10, %p5241_p4  ;;  %s5231_s18 = sadd.s32 4, %s3691_s27 }
  0xad   : > { %5568 = sst [smem:[#allocation117_spill]] %s3772_s14  ;;  %s195_s3 = sadd.s32 4, %s3695_s0 }
  0xae   : > { %s5569_s4 = scalar_select %p3776_p11, 1, 0 }
  0xaf   : > { %p3786_p1 = por %p181_p0, %p5233_p6  ;;  %s193_s24 = sld [smem:[#allocation3 + %s5231_s18]] }
  0xb0   : > { %s165_s19 = ssub.s32 %s161_s7, %s164_s21  ;;  %s196_s14 = sld [smem:[#allocation3 + %s195_s3]] }
  0xb1   : > { %s5570_s29 = scalar_select %p3786_p1, 1, 0 }
  0xb2   : > { %p166_p2 = scmp.eq.s32.totalorder %s165_s19, 0  ;;  %s200_s1 = sadd.s32 1, %s5566_s9 }
  0xb3   : > { %5571 = sst [smem:[#allocation118_spill]] %s5570_s29  ;;  %p207_p9 = scmp.ne.s32.totalorder %s5566_s9, %s5567_s11 }
  0xb4   : > { %p213_p10 = scmp.ne.s32.totalorder %s5567_s11, %s5509_s30  ;;  %s5236_s21 = sadd.s32 5, %s3691_s27 }
  0xb5   : > { %s3798_s26 = scalar_select %p166_p2, %s5519_s2, %s168_s10  }
  0xb6   : > { %p3802_p0 = por %p207_p9, %p5241_p4  ;;  %p3808_p1 = por %p213_p10, %p5233_p6 }
  0xb7   : > { %5572 = sst [smem:[#allocation119_spill]] %s3798_s26  ;;  %s227_s3 = sadd.s32 5, %s3695_s0 }
  0xb8   : > { %s5573_s18 = scalar_select %p3802_p0, 1, 0 }
  0xb9   : > { %s5575_s7 = scalar_select %p3808_p1, 1, 0 }
  0xba   : > { %5574 = sst [smem:[#allocation120_spill]] %s5573_s18  ;;  %s197_s19 = ssub.s32 %s193_s24, %s196_s14 }
  0xbb   : > { %5576 = sst [smem:[#allocation121_spill]] %s5575_s7  ;;  %s5577_s10 = sld [smem:[#allocation91_spill]] }
  0xbc   : > { %s225_s30 = sld [smem:[#allocation3 + %s5236_s21]]  ;;  %p198_p2 = scmp.eq.s32.totalorder %s197_s19, 0 }
  0xbd   : > { %s228_s11 = sld [smem:[#allocation3 + %s227_s3]]  ;;  %s232_s26 = sadd.s32 1, %s5535_s13 }
  0xbe   : > { %p239_p9 = scmp.ne.s32.totalorder %s5535_s13, %s5532_s15  ;;  %s5950_s9 = smov (!%p198_p2, %s5566_s9), %s200_s1 }
  0xbf   : > { %5578 = sst [smem:[#allocation122_spill]] %s5950_s9  ;;  %p245_p6 = scmp.ne.s32.totalorder %s5532_s15, %s5503_s28 }
  0xc0   : > { %p3824_p10 = por %p239_p9, %p5241_p4  ;;  %s5245_s24 = sadd.s32 6, %s3691_s27 }
  0xc1   : > { %s259_s19 = sadd.s32 6, %s3695_s0  ;;  %p5580_p1 = scmp.eq.s32.totalorder %s3684_s16, 0 }
  0xc2   : > { %s257_s21 = sld [smem:[#allocation3 + %s5245_s24]]  ;;  %s264_s29 = sadd.s32 1, %s5528_s17 }
  0xc3   : > { %p3834_p5 = por %p245_p6, %p5580_p1  ;;  %s5583_s1 = sld [smem:[#allocation90_spill]] }
  0xc4   : > { %s229_s8 = ssub.s32 %s225_s30, %s228_s11  ;;  %s5584_s9 = sld [smem:[#allocation99_spill]] }
  0xc5   : > { %s5581_s3 = scalar_select %p3834_p5, 1, 0 }
  0xc6   : > { %s260_s7 = sld [smem:[#allocation3 + %s259_s19]]  ;;  %p230_p2 = scmp.eq.s32.totalorder %s229_s8, 0 }
  0xc7   : > { %5582 = sst [smem:[#allocation123_spill]] %s5581_s3  ;;  %s5585_s28 = sld [smem:[#allocation89_spill]] }
  0xc8   : > { %p271_p9 = scmp.ne.s32.totalorder %s5528_s17, %s5577_s10  ;;  %p277_p4 = scmp.ne.s32.totalorder %s5577_s10, %s5497_s25 }
  0xc9   : > { %s3846_s15 = scalar_select %p230_p2, %s5535_s13, %s232_s26  }
  0xca   : > { %p5587_p6 = scmp.eq.s32.totalorder %s5536_s23, 0  ;;  %p5590_p5 = scmp.eq.s32.totalorder %s3684_s16, 0 }
  0xcb   : > { %5586 = sst [smem:[#allocation89_spill]] %s3846_s15  ;;  %s5256_s30 = sadd.s32 7, %s3691_s27 }
  0xcc   : > { %p3850_p1 = por %p271_p9, %p5587_p6  ;;  %p3856_p13 = por %p277_p4, %p5590_p5 }
  0xcd   : > { %s291_s11 = sadd.s32 7, %s3695_s0  ;;  %s261_s19 = ssub.s32 %s257_s21, %s260_s7 }
  0xce   : > { %s5588_s24 = scalar_select %p3850_p1, 1, 0 }
  0xcf   : > { %s5591_s8 = scalar_select %p3856_p13, 1, 0 }
  0xd0   : > { %5589 = sst [smem:[#allocation124_spill]] %s5588_s24  ;;  %s5593_s25 = sld [smem:[#allocation98_spill]] }
  0xd1   : > { %5592 = sst [smem:[#allocation125_spill]] %s5591_s8  ;;  %s5594_s26 = sld [smem:[#allocation97_spill]] }
  0xd2   : > { %s289_s10 = sld [smem:[#allocation3 + %s5256_s30]]  ;;  %p262_p2 = scmp.eq.s32.totalorder %s261_s19, 0 }
  0xd3   : > { %s5595_s15 = sld [smem:[#allocation96_spill]]  ;;  %s296_s3 = sadd.s32 1, %s5583_s1 }
  0xd4   : > { %s292_s5 = sld [smem:[#allocation3 + %s291_s11]]  ;;  %p303_p9 = scmp.ne.s32.totalorder %s5583_s1, %s5584_s9 }
  0xd5   : > { %s3868_s24 = scalar_select %p262_p2, %s5528_s17, %s264_s29  }
  0xd6   : > { %p5597_p4 = pmov %p5587_p6  ;;  %p309_p6 = scmp.ne.s32.totalorder %s5584_s9, %s5585_s28 }
  0xd7   : > { %5596 = sst [smem:[#allocation96_spill]] %s3868_s24  ;;  %s5265_s21 = sadd.s32 8, %s3691_s27 }
  0xd8   : > { %p3872_p5 = por %p303_p9, %p5597_p4  ;;  %s323_s19 = sadd.s32 8, %s3695_s0 }
  0xd9   : > { %p5600_p13 = scmp.eq.s32.totalorder %s3684_s16, 0  ;;  %s321_s30 = sld [smem:[#allocation3 + %s5265_s21]] }
  0xda   : > { %s5598_s7 = scalar_select %p3872_p5, 1, 0 }
  0xdb   : > { %p3882_p8 = por %p309_p6, %p5600_p13  ;;  %s5603_s29 = sld [smem:[#allocation88_spill]] }
  0xdc   : > { %5599 = sst [smem:[#allocation126_spill]] %s5598_s7  ;;  %s293_s24 = ssub.s32 %s289_s10, %s292_s5 }
  0xdd   : > { %s5601_s11 = scalar_select %p3882_p8, 1, 0 }
  0xde   : > { %s5604_s6 = sld [smem:[#allocation87_spill]]  ;;  %p294_p2 = scmp.eq.s32.totalorder %s293_s24, 0 }
  0xdf   : > { %5602 = sst [smem:[#allocation127_spill]] %s5601_s11  ;;  %s328_s17 = sadd.s32 1, %s5593_s25 }
  0xe0   : > { %s324_s8 = sld [smem:[#allocation3 + %s323_s19]]  ;;  %p335_p9 = scmp.ne.s32.totalorder %s5593_s25, %s5594_s26 }
  0xe1   : > { %s5605_s9 = sld [smem:[#allocation86_spill]]  ;;  %p341_p4 = scmp.ne.s32.totalorder %s5594_s26, %s5595_s15 }
  0xe2   : > { %s5952_s1 = smov (!%p294_p2, %s5583_s1), %s296_s3  ;;  %p5607_p13 = scmp.eq.s32.totalorder %s5536_s23, 0 }
  0xe3   : > { %5606 = sst [smem:[#allocation86_spill]] %s5952_s1  ;;  %p5610_p8 = scmp.eq.s32.totalorder %s3684_s16, 0 }
  0xe4   : > { %p3898_p6 = por %p335_p9, %p5607_p13  ;;  %s5270_s10 = sadd.s32 9, %s3691_s27 }
  0xe5   : > { %p3904_p1 = por %p341_p4, %p5610_p8  ;;  %s355_s19 = sadd.s32 9, %s3695_s0 }
  0xe6   : > { %s5608_s28 = scalar_select %p3898_p6, 1, 0 }
  0xe7   : > { %s5611_s5 = scalar_select %p3904_p1, 1, 0 }
  0xe8   : > { %5609 = sst [smem:[#allocation128_spill]] %s5608_s28  ;;  %s325_s24 = ssub.s32 %s321_s30, %s324_s8 }
  0xe9   : > { %5612 = sst [smem:[#allocation129_spill]] %s5611_s5  ;;  %s5613_s26 = sld [smem:[#allocation85_spill]] }
  0xea   : > { %s353_s15 = sld [smem:[#allocation3 + %s5270_s10]]  ;;  %p326_p2 = scmp.eq.s32.totalorder %s325_s24, 0 }
  0xeb   : > { %s5614_s3 = sld [smem:[#allocation84_spill]]  ;;  %s5615_s1 = sld [smem:[#allocation83_spill]] }
  0xec   : > { %s356_s21 = sld [smem:[#allocation3 + %s355_s19]]  ;;  %s360_s18 = sadd.s32 1, %s5603_s29 }
  0xed   : > { %p367_p9 = scmp.ne.s32.totalorder %s5603_s29, %s5604_s6  ;;  %s5954_s25 = smov (!%p326_p2, %s5593_s25), %s328_s17 }
  0xee   : > { %5616 = sst [smem:[#allocation83_spill]] %s5954_s25  ;;  %p5617_p8 = pmov %p5607_p13 }
  0xef   : > { %p373_p13 = scmp.ne.s32.totalorder %s5604_s6, %s5605_s9  ;;  %s5277_s30 = sadd.s32 10, %s3691_s27 }
  0xf0   : > { %p3920_p4 = por %p367_p9, %p5617_p8  ;;  %s387_s24 = sadd.s32 10, %s3695_s0 }
  0xf1   : > { %p5619_p1 = scmp.eq.s32.totalorder %s3684_s16, 0  ;;  %s385_s10 = sld [smem:[#allocation3 + %s5277_s30]] }
  0xf2   : > { %s5618_s8 = scalar_select %p3920_p4, 1, 0 }
  0xf3   : > { %p3930_p6 = por %p373_p13, %p5619_p1  ;;  %s5622_s17 = sld [smem:[#allocation82_spill]] }
  0xf4   : > { %s357_s25 = ssub.s32 %s353_s15, %s356_s21  ;;  %s5623_s7 = sld [smem:[#allocation81_spill]] }
  0xf5   : > { %s5620_s19 = scalar_select %p3930_p6, 1, 0 }
  0xf6   : > { %s388_s5 = sld [smem:[#allocation3 + %s387_s24]]  ;;  %p358_p2 = scmp.eq.s32.totalorder %s357_s25, 0 }
  0xf7   : > { %5621 = sst [smem:[#allocation130_spill]] %s5620_s19  ;;  %s392_s11 = sadd.s32 1, %s5613_s26 }
  0xf8   : > { %s5624_s6 = sld [smem:[#allocation80_spill]]  ;;  %p399_p9 = scmp.ne.s32.totalorder %s5613_s26, %s5614_s3 }
  0xf9   : > { %p405_p8 = scmp.ne.s32.totalorder %s5614_s3, %s5615_s1  ;;  %s5956_s29 = smov (!%p358_p2, %s5603_s29), %s360_s18 }
  0xfa   : > { %5625 = sst [smem:[#allocation80_spill]] %s5956_s29  ;;  %p5626_p1 = scmp.eq.s32.totalorder %s5536_s23, 0 }
  0xfb   : > { %p5629_p6 = scmp.eq.s32.totalorder %s3684_s16, 0  ;;  %s5282_s15 = sadd.s32 11, %s3691_s27 }
  0xfc   : > { %p3946_p13 = por %p399_p9, %p5626_p1  ;;  %s419_s24 = sadd.s32 11, %s3695_s0 }
  0xfd   : > { %p3952_p0 = por %p405_p8, %p5629_p6  ;;  %s389_s25 = ssub.s32 %s385_s10, %s388_s5 }
  0xfe   : > { %s5627_s9 = scalar_select %p3946_p13, 1, 0 }
  0xff   : > { %s5630_s21 = scalar_select %p3952_p0, 1, 0 }
 0x100   : > { %5628 = sst [smem:[#allocation131_spill]] %s5627_s9  ;;  %s5632_s3 = sld [smem:[#allocation79_spill]] }
 0x101   : > { %5631 = sst [smem:[#allocation132_spill]] %s5630_s21  ;;  %s5633_s18 = sld [smem:[#allocation78_spill]] }
 0x102   : > { %s417_s1 = sld [smem:[#allocation3 + %s5282_s15]]  ;;  %p390_p2 = scmp.eq.s32.totalorder %s389_s25, 0 }
 0x103   : > { %s5634_s30 = sld [smem:[#allocation77_spill]]  ;;  %s424_s19 = sadd.s32 1, %s5622_s17 }
 0x104   : > { %s420_s29 = sld [smem:[#allocation3 + %s419_s24]]  ;;  %p431_p9 = scmp.ne.s32.totalorder %s5622_s17, %s5623_s7 }
 0x105   : > { %s5958_s26 = smov (!%p390_p2, %s5613_s26), %s392_s11  ;;  %p5636_p6 = pmov %p5626_p1 }
 0x106   : > { %5635 = sst [smem:[#allocation77_spill]] %s5958_s26  ;;  %p437_p1 = scmp.ne.s32.totalorder %s5623_s7, %s5624_s6 }
 0x107   : > { %p3968_p8 = por %p431_p9, %p5636_p6  ;;  %s5291_s10 = sadd.s32 12, %s3691_s27 }
 0x108   : > { %s451_s25 = sadd.s32 12, %s3695_s0  ;;  %p5638_p0 = scmp.eq.s32.totalorder %s3684_s16, 0 }
 0x109   : > { %s5637_s5 = scalar_select %p3968_p8, 1, 0 }
 0x10a   : > { %p3978_p13 = por %p437_p1, %p5638_p0  ;;  %s449_s15 = sld [smem:[#allocation3 + %s5291_s10]] }
 0x10b   : > { %s5641_s11 = sld [smem:[#allocation76_spill]]  ;;  %s421_s26 = ssub.s32 %s417_s1, %s420_s29 }
 0x10c   : > { %s5639_s24 = scalar_select %p3978_p13, 1, 0 }
 0x10d   : > { %s5642_s21 = sld [smem:[#allocation75_spill]]  ;;  %p422_p2 = scmp.eq.s32.totalorder %s421_s26, 0 }
 0x10e   : > { %5640 = sst [smem:[#allocation133_spill]] %s5639_s24  ;;  %s456_s28 = sadd.s32 1, %s5632_s3 }
 0x10f   : > { %s452_s9 = sld [smem:[#allocation3 + %s451_s25]]  ;;  %p463_p9 = scmp.ne.s32.totalorder %s5632_s3, %s5633_s18 }
 0x110   : > { %s5643_s7 = sld [smem:[#allocation74_spill]]  ;;  %p469_p6 = scmp.ne.s32.totalorder %s5633_s18, %s5634_s30 }
 0x111   : > { %s5960_s17 = smov (!%p422_p2, %s5622_s17), %s424_s19  ;;  %p5645_p0 = scmp.eq.s32.totalorder %s5536_s23, 0 }
 0x112   : > { %5644 = sst [smem:[#allocation74_spill]] %s5960_s17  ;;  %p5648_p13 = scmp.eq.s32.totalorder %s3684_s16, 0 }
 0x113   : > { %p3994_p1 = por %p463_p9, %p5645_p0  ;;  %s5296_s26 = sadd.s32 13, %s3691_s27 }
 0x114   : > { %p4000_p3 = por %p469_p6, %p5648_p13  ;;  %s483_s1 = sadd.s32 13, %s3695_s0 }
 0x115   : > { %s5646_s6 = scalar_select %p3994_p1, 1, 0 }
 0x116   : > { %s5649_s29 = scalar_select %p4000_p3, 1, 0 }
 0x117   : > { %5647 = sst [smem:[#allocation134_spill]] %s5646_s6  ;;  %s453_s25 = ssub.s32 %s449_s15, %s452_s9 }
 0x118   : > { %5650 = sst [smem:[#allocation135_spill]] %s5649_s29  ;;  %s5651_s30 = sld [smem:[#allocation73_spill]] }
 0x119   : > { %s481_s18 = sld [smem:[#allocation3 + %s5296_s26]]  ;;  %p454_p2 = scmp.eq.s32.totalorder %s453_s25, 0 }
 0x11a   : > { %s5652_s19 = sld [smem:[#allocation72_spill]]  ;;  %s5653_s10 = sld [smem:[#allocation71_spill]] }
 0x11b   : > { %s484_s17 = sld [smem:[#allocation3 + %s483_s1]]  ;;  %s488_s24 = sadd.s32 1, %s5641_s11 }
 0x11c   : > { %p495_p9 = scmp.ne.s32.totalorder %s5641_s11, %s5642_s21  ;;  %s5962_s3 = smov (!%p454_p2, %s5632_s3), %s456_s28 }
 0x11d   : > { %5654 = sst [smem:[#allocation71_spill]] %s5962_s3  ;;  %p5655_p13 = pmov %p5645_p0 }
 0x11e   : > { %p501_p0 = scmp.ne.s32.totalorder %s5642_s21, %s5643_s7  ;;  %s5307_s15 = sadd.s32 14, %s3691_s27 }
 0x11f   : > { %p4016_p6 = por %p495_p9, %p5655_p13  ;;  %s515_s25 = sadd.s32 14, %s3695_s0 }
 0x120   : > { %p5658_p3 = scmp.eq.s32.totalorder %s3684_s16, 0  ;;  %s513_s26 = sld [smem:[#allocation3 + %s5307_s15]] }
 0x121   : > { %s5656_s9 = scalar_select %p4016_p6, 1, 0 }
 0x122   : > { %p4026_p1 = por %p501_p0, %p5658_p3  ;;  %s5661_s28 = sld [smem:[#allocation70_spill]] }
 0x123   : > { %5657 = sst [smem:[#allocation136_spill]] %s5656_s9  ;;  %s485_s3 = ssub.s32 %s481_s18, %s484_s17 }
 0x124   : > { %s5659_s1 = scalar_select %p4026_p1, 1, 0 }
 0x125   : > { %s5662_s29 = sld [smem:[#allocation69_spill]]  ;;  %p486_p2 = scmp.eq.s32.totalorder %s485_s3, 0 }
 0x126   : > { %5660 = sst [smem:[#allocation137_spill]] %s5659_s1  ;;  %s520_s20 = sadd.s32 1, %s5651_s30 }
 0x127   : > { %s516_s6 = sld [smem:[#allocation3 + %s515_s25]]  ;;  %p527_p9 = scmp.ne.s32.totalorder %s5651_s30, %s5652_s19 }
 0x128   : > { %s5663_s21 = sld [smem:[#allocation68_spill]]  ;;  %s5664_s7 = sld [smem:[#allocation110_spill]] }
 0x129   : > { %p533_p3 = scmp.ne.s32.totalorder %s5652_s19, %s5653_s10  ;;  %s5665_s9 = sld [smem:[#allocation67_spill]] }
 0x12a   : > { %s5964_s11 = smov (!%p486_p2, %s5641_s11), %s488_s24  ;;  %p4042_p0 = por %p527_p9, %p5655_p13 }
 0x12b   : > { %5666 = sst [smem:[#allocation68_spill]] %s5964_s11  ;;  %p5668_p1 = scmp.eq.s32.totalorder %s3684_s16, 0 }
 0x12c   : > { %s5667_s17 = scalar_select %p4042_p0, 1, 0 }
 0x12d   : > { %p4048_p7 = por %p533_p3, %p5668_p1  ;;  %s5318_s18 = sadd.s32 15, %s3691_s27 }
 0x12e   : > { %s5671_s25 = sld [smem:[#allocation66_spill]]  ;;  %s547_s15 = sadd.s32 15, %s3695_s0 }
 0x12f   : > { %s5669_s3 = scalar_select %p4048_p7, 1, 0 }
 0x130   : > { %s517_s1 = ssub.s32 %s513_s26, %s516_s6  ;;  %s545_s10 = sld [smem:[#allocation3 + %s5318_s18]] }
 0x131   : > { %5670 = sst [smem:[#allocation138_spill]] %s5669_s3  ;;  %p518_p2 = scmp.eq.s32.totalorder %s517_s1, 0 }
 0x132   : > { %s548_s24 = sld [smem:[#allocation3 + %s547_s15]]  ;;  %s552_s19 = sadd.s32 1, %s5661_s28 }
 0x133   : > { %s5672_s11 = sld [smem:[#allocation65_spill]]  ;;  %p559_p9 = scmp.ne.s32.totalorder %s5661_s28, %s5662_s29 }
 0x134   : > { %s5966_s30 = smov (!%p518_p2, %s5651_s30), %s520_s20  ;;  %p5674_p1 = pmov %p5655_p13 }
 0x135   : > { %5673 = sst [smem:[#allocation139_spill]] %s5966_s30  ;;  %p565_p13 = scmp.ne.s32.totalorder %s5662_s29, %s5663_s21 }
 0x136   : > { %p4064_p3 = por %p559_p9, %p5674_p1  ;;  %s575_s0 = ssub.s32 %s5536_s23, %s5664_s7 }
 0x137   : > { %s578_s6 = sadd.s32 1, %s5665_s9  ;;  %p5676_p7 = scmp.eq.s32.totalorder %s3684_s16, 0 }
 0x138   : > { %s5675_s3 = scalar_select %p4064_p3, 1, 0 }
 0x139   : > { %p4075_p0 = por %p565_p13, %p5676_p7  ;;  %p576_p6 = scmp.eq.s32.totalorder %s575_s0, 0 }
 0x13a   : > { %s549_s15 = ssub.s32 %s545_s10, %s548_s24  ;;  %p588_p8 = scmp.ne.s32.totalorder %s5665_s9, %s5671_s25 }
 0x13b   : > { %s5677_s26 = scalar_select %p4075_p0, 1, 0 }
 0x13c   : > { %p550_p4 = scmp.eq.s32.totalorder %s549_s15, 0  ;;  %p589_p5 = scmp.eq.s32.totalorder %s3684_s16, 1 }
 0x13d   : > { %5678 = sst [smem:[#allocation140_spill]] %s5677_s26  ;;  %s5968_s9 = smov (!%p576_p6, %s5665_s9), %s578_s6 }
 0x13e   : > { %5679 = sst [smem:[#allocation141_spill]] %s5968_s9  ;;  %s5970_s28 = smov (!%p550_p4, %s5661_s28), %s552_s19 }
 0x13f   : > { %5680 = sst [smem:[#allocation142_spill]] %s5970_s28  ;;  %p4088_p2 = por %p589_p5, %p588_p8 }
 0x140   : > { %p594_p9 = scmp.ne.s32.totalorder %s5671_s25, %s5672_s11  ;;  %s5683_s29 = sadd.s32 4294967294, %s5536_s23  }
 0x141   : > { %s5681_s20 = scalar_select %p4088_p2, 1, 0 }
 0x142   : > { %p595_p1 = scmp.eq.s32.totalorder %s5683_s29, 1  ;;  %p5327_p13 = scmp.ge.s32.totalorder %s5536_s23, 2 }
 0x143   : > { %5682 = sst [smem:[#allocation143_spill]] %s5681_s20  ;;  %s4104_s11 = sand.u32 (!%p5327_p13), 1, %s5536_s23  }
 0x144   : > { %p4096_p7 = por %p595_p1, %p594_p9  ;;  %611 = sbr.rel (%p5327_p13) target bundleno = 852 (0x354), region = 16 }
 0x145   : > { %s637_s21 = sand.u32 (!%p5327_p13), 1, %s5526_s12   ;;  %s5686_s10 = sadd.s32 (!%p5327_p13), 1, %s3691_s27 }
 0x146   : > { %s5684_s1 = scalar_select %p4096_p7, 1, 0 }
 0x147   : > { %s1744_s7 = sshll.u32 (!%p5327_p13), %s637_s21, 1  ;;  %s679_s0 = sand.u32 (!%p5327_p13), 1, %s5519_s2  }
 0x148   : > { %5685 = sst [smem:[#allocation144_spill]] %s5684_s1  ;;  %s639_s24 = scalar_lea.vmem (!%p5327_p13), [#allocation7], %s1744_s7 }
 0x149   : > { %s649_s19 = sshll.u32 (!%p5327_p13), %s639_s24, 4  ;;  %s1750_s15 = sshll.u32 (!%p5327_p13), %s679_s0, 1  ;;  %s4114_s19 = int_to_ptr.vmem [resolvable:$true] %s649_s19 }
 0x14a   : > { %s721_s29 = sand.u32 (!%p5327_p13), 1, %s5535_s13   ;;  %s5687_s30 = sadd.s32 (!%p5327_p13), 3, %s3691_s27 }
 0x14b   : > { %s1848_s25 = scalar_select %p3731_p12, [#allocation3], [#allocation32] }
 0x14c   : > { %s5972_s10 = smov (!%p3731_p12, %s5686_s10), 0  ;;  %s5974_s30 = smov (!%p3776_p11, %s5687_s30), 0 }
 0x14d   : > { %s642_s6 = sld [smem:[%s1848_s25 + %s5972_s10]]  ;;  %s681_s21 = scalar_lea.vmem [#allocation10], %s1750_s15 }
 0x14e   : > { %s1854_s18 = scalar_select %p3776_p11, [#allocation3], [#allocation34] }
 0x14f   : > { %s4123_s12 = sshll.u32 %s681_s21, 4  ;;  %s4125_s28 = sshll.u32 %s721_s29, 1  ;;  %s4152_s12 = int_to_ptr.vmem [resolvable:$true] %s4123_s12 }
 0x150   : > { %s4127_s7 = sld [smem:[%s1854_s18 + %s5974_s30]]  ;;  %s5333_s20 = scalar_lea.sflag [#allocation8], %s4104_s11 }
 0x151   : > { %s5688_s25 = sld [smem:[#allocation147_spill]] }
 0x153   : > { %s1746_s9 = sshll.u32 %s642_s6, 5 }
 0x157   : > { %s5689_s10 = smov %s5688_s25  ;;  %s647_s1 = scalar_lea.hbm %s5688_s25, %s1746_s9 }
 0x158   : > { %s2343_s0 = scalar_lea.hbm %s647_s1, 32  ;;  %s2347_s15 = scalar_lea.hbm %s5689_s10, 1024 }
 0x159   : > { %p2344_p5 = scmp.ne.s32.totalorder %s647_s1, %s2343_s0  ;;  %p2348_p6 = scmp.lt.u32.totalorder %s647_s1, %s5689_s10 }
 0x15a   : > { %p2349_p9 = scmp.lt.u32.totalorder %s2347_s15, %s2343_s0  ;;  %p2351_p13 = scmp.lt.u32.totalorder %s2343_s0, %s647_s1 }
 0x15b   : > { %p2345_p4 = pnand %p2344_p5, %p3731_p12 }
 0x15c   : > { %p2350_p1 = por %p2349_p9, %p2348_p6 }
 0x15d   : > { %p2346_p8 = pneg %p2345_p4 }
 0x15e   : > { %p2352_p7 = por %p2351_p13, %p2350_p1 }
 0x160   : > { %p2353_p2 = pnand %p2352_p7, %p2346_p8 }
 0x162   : > { %2356 = shalt.err (!%p2353_p2)
}
 0x163   : > { %s2357_s2 = scalar_lea.vmem %s4114_s19, 32  ;;  %s3306_s13 = smov [#allocation7]  }
 0x164   : > { %p2358_p5 = scmp.ne.s32.totalorder %s4114_s19, %s2357_s2  ;;  %s2361_s30 = sshll.u32 %s3306_s13, 4  ;;  %s2362_s30 = int_to_ptr.vmem [resolvable:$false] %s2361_s30 }
 0x165   : > { %s2363_s9 = scalar_lea.vmem %s2362_s30, 64  ;;  %p2364_p3 = scmp.lt.s32.totalorder %s4114_s19, %s2362_s30 }
 0x166   : > { %p2359_p4 = pnand %p2358_p5, %p3731_p12  ;;  %p2365_p11 = scmp.lt.s32.totalorder %s2363_s9, %s2357_s2 }
 0x168   : > { %p2360_p0 = pneg %p2359_p4  ;;  %p2366_p6 = por %p2365_p11, %p2364_p3 }
 0x16a   : > { %p2367_p9 = pnand %p2366_p6, %p2360_p0 }
 0x16c   : > { %2370 = shalt.err (!%p2367_p9)
}
 0x16d   : > { %1850 = dma.hbm_to_vmem [thread:$0]  (%p3731_p12), %s647_s1, 32, %s4114_s19, %s5333_s20  }
 0x16e   : > { %s1860_s18 = scalar_select %p3824_p10, [#allocation3], [#allocation36] }
 0x16f   : > { %s5690_s26 = sadd.s32 5, %s3691_s27  ;;  %s1752_s22 = sshll.u32 %s4127_s7, 5 }
 0x170   : > { %s5976_s26 = smov (!%p3824_p10, %s5690_s26), 0  ;;  %s723_s6 = scalar_lea.vmem [#allocation13], %s4125_s28 }
 0x171   : > { %s4162_s24 = sshll.u32 %s723_s6, 4  ;;  %s5691_s15 = sld [smem:[#allocation149_spill]]  ;;  %s4197_s24 = int_to_ptr.vmem [resolvable:$true] %s4162_s24 }
 0x172   : > { %s4169_s1 = sld [smem:[%s1860_s18 + %s5976_s26]]  ;;  %s5335_s19 = scalar_lea.sflag [#allocation11], %s4104_s11 }
 0x173   : > { %p5693_p11 = scmp.ne.s32.totalorder %s5569_s4, 0 }
 0x177   : > { %s5692_s21 = smov %s5691_s15  ;;  %s4167_s29 = scalar_lea.hbm %s5691_s15, %s1752_s22 }
 0x178   : > { %s2371_s2 = scalar_lea.hbm %s4167_s29, 32  ;;  %s2375_s13 = scalar_lea.hbm %s5692_s21, 1024 }
 0x179   : > { %p2372_p12 = scmp.ne.s32.totalorder %s4167_s29, %s2371_s2  ;;  %p2376_p2 = scmp.lt.u32.totalorder %s4167_s29, %s5692_s21 }
 0x17a   : > { %p2377_p7 = scmp.lt.u32.totalorder %s2375_s13, %s2371_s2  ;;  %p2379_p8 = scmp.lt.u32.totalorder %s2371_s2, %s4167_s29 }
 0x17b   : > { %p2373_p0 = pnand %p2372_p12, %p5693_p11 }
 0x17c   : > { %p2378_p13 = por %p2377_p7, %p2376_p2 }
 0x17d   : > { %p2374_p3 = pneg %p2373_p0 }
 0x17e   : > { %p2380_p1 = por %p2379_p8, %p2378_p13 }
 0x180   : > { %p2381_p5 = pnand %p2380_p1, %p2374_p3 }
 0x182   : > { %2384 = shalt.err (!%p2381_p5)
}
 0x183   : > { %s2385_s18 = scalar_lea.vmem %s4152_s12, 32  ;;  %s3307_s26 = smov [#allocation10]  }
 0x184   : > { %p2386_p4 = scmp.ne.s32.totalorder %s4152_s12, %s2385_s18  ;;  %s2389_s22 = sshll.u32 %s3307_s26, 4  ;;  %s2390_s22 = int_to_ptr.vmem [resolvable:$false] %s2389_s22 }
 0x185   : > { %s2391_s6 = scalar_lea.vmem %s2390_s22, 64  ;;  %p2392_p12 = scmp.lt.s32.totalorder %s4152_s12, %s2390_s22 }
 0x186   : > { %p2387_p6 = pnand %p2386_p4, %p5693_p11  ;;  %p2393_p0 = scmp.lt.s32.totalorder %s2391_s6, %s2385_s18 }
 0x188   : > { %p2388_p9 = pneg %p2387_p6  ;;  %p2394_p2 = por %p2393_p0, %p2392_p12 }
 0x18a   : > { %p2395_p7 = pnand %p2394_p2, %p2388_p9 }
 0x18c   : > { %2398 = shalt.err (!%p2395_p7)
}
 0x18d   : > { %s5694_s25 = sld [smem:[#allocation90_spill]]  ;;  %s5695_s0 = sld [smem:[#allocation126_spill]] }
 0x18e   : > { %s5696_s15 = sld [smem:[#allocation88_spill]]  ;;  %s1758_s13 = sshll.u32 %s4169_s1, 5 }
 0x18f   : > { %1856 = dma.hbm_to_vmem [thread:$0]  (%p5693_p11), %s4167_s29, 32, %s4152_s12, %s5335_s19  }
 0x190   : > { %s5698_s18 = sld [smem:[#allocation151_spill]]  ;;  %s5334_s12 = scalar_lea.sflag [#allocation14], %s4104_s11 }
 0x193   : > { %s763_s2 = sand.u32 1, %s5694_s25   ;;  %p5697_p3 = scmp.ne.s32.totalorder %s5695_s0, 0 }
 0x194   : > { %s1762_s28 = sshll.u32 %s763_s2, 1  ;;  %s805_s4 = sand.u32 1, %s5696_s15  }
 0x195   : > { %s1866_s7 = scalar_select %p5697_p3, [#allocation3], [#allocation38] }
 0x196   : > { %s5699_s6 = smov %s5698_s18  ;;  %s4206_s26 = scalar_lea.hbm %s5698_s18, %s1758_s13 }
 0x197   : > { %s765_s22 = scalar_lea.vmem [#allocation16], %s1762_s28  ;;  %s2399_s29 = scalar_lea.hbm %s4206_s26, 32 }
 0x198   : > { %s4208_s20 = sshll.u32 %s765_s22, 4  ;;  %p2400_p11 = scmp.ne.s32.totalorder %s4206_s26, %s2399_s29  ;;  %s4239_s20 = int_to_ptr.vmem [resolvable:$true] %s4208_s20 }
 0x199   : > { %s2403_s2 = scalar_lea.hbm %s5699_s6, 1024  ;;  %p2404_p1 = scmp.lt.u32.totalorder %s4206_s26, %s5699_s6 }
 0x19a   : > { %p2401_p13 = pnand %p2400_p11, %p3824_p10  ;;  %p2405_p5 = scmp.lt.u32.totalorder %s2403_s2, %s2399_s29 }
 0x19b   : > { %p2407_p6 = scmp.lt.u32.totalorder %s2399_s29, %s4206_s26 }
 0x19c   : > { %p2402_p8 = pneg %p2401_p13  ;;  %p2406_p4 = por %p2405_p5, %p2404_p1 }
 0x19e   : > { %p2408_p9 = por %p2407_p6, %p2406_p4 }
 0x1a0   : > { %p2409_p12 = pnand %p2408_p9, %p2402_p8 }
 0x1a2   : > { %2412 = shalt.err (!%p2409_p12)
}
 0x1a3   : > { %s2413_s28 = scalar_lea.vmem %s4197_s24, 32  ;;  %s3308_s9 = smov [#allocation13]  }
 0x1a4   : > { %p2414_p0 = scmp.ne.s32.totalorder %s4197_s24, %s2413_s28  ;;  %s2417_s18 = sshll.u32 %s3308_s9, 4  ;;  %s2418_s18 = int_to_ptr.vmem [resolvable:$false] %s2417_s18 }
 0x1a5   : > { %s2419_s22 = scalar_lea.vmem %s2418_s18, 64  ;;  %p2420_p11 = scmp.lt.s32.totalorder %s4197_s24, %s2418_s18 }
 0x1a6   : > { %p2415_p2 = pnand %p2414_p0, %p3824_p10  ;;  %p2421_p13 = scmp.lt.s32.totalorder %s2419_s22, %s2413_s28 }
 0x1a8   : > { %p2416_p7 = pneg %p2415_p2  ;;  %p2422_p1 = por %p2421_p13, %p2420_p11 }
 0x1aa   : > { %p2423_p5 = pnand %p2422_p1, %p2416_p7 }
 0x1ac   : > { %2426 = shalt.err (!%p2423_p5)
}
 0x1ad   : > { %s5700_s29 = sld [smem:[#allocation82_spill]]  ;;  %s5701_s1 = sadd.s32 7, %s3691_s27 }
 0x1ae   : > { %1862 = dma.hbm_to_vmem [thread:$0]  (%p3824_p10), %s4206_s26, 32, %s4197_s24, %s5334_s12  }
 0x1af   : > { %s5978_s1 = smov (!%p5697_p3, %s5701_s1), 0  ;;  %s1768_s14 = sshll.u32 %s805_s4, 1 }
 0x1b0   : > { %s768_s25 = sld [smem:[%s1866_s7 + %s5978_s1]]  ;;  %p5702_p8 = scmp.ne.s32.totalorder %s5618_s8, 0 }
 0x1b1   : > { %s5703_s30 = sadd.s32 9, %s3691_s27  ;;  %s807_s13 = scalar_lea.vmem [#allocation19], %s1768_s14 }
 0x1b2   : > { %s1872_s2 = scalar_select %p5702_p8, [#allocation3], [#allocation40] }
 0x1b3   : > { %s5980_s30 = smov (!%p5702_p8, %s5703_s30), 0  ;;  %s817_s28 = sshll.u32 %s807_s13, 4  ;;  %s4255_s28 = int_to_ptr.vmem [resolvable:$true] %s817_s28 }
 0x1b4   : > { %s847_s9 = sand.u32 1, %s5700_s29   ;;  %s4253_s24 = sld [smem:[%s1872_s2 + %s5980_s30]] }
 0x1b5   : > { %s4257_s26 = sshll.u32 %s847_s9, 1  ;;  %s5704_s22 = sld [smem:[#allocation153_spill]] }
 0x1b6   : > { %s1764_s15 = sshll.u32 %s768_s25, 5  ;;  %s5337_s7 = scalar_lea.sflag [#allocation17], %s4104_s11 }
 0x1bb   : > { %s5705_s12 = smov %s5704_s22  ;;  %s773_s19 = scalar_lea.hbm %s5704_s22, %s1764_s15 }
 0x1bc   : > { %s2427_s1 = scalar_lea.hbm %s773_s19, 32  ;;  %s2431_s29 = scalar_lea.hbm %s5705_s12, 1024 }
 0x1bd   : > { %p2428_p10 = scmp.ne.s32.totalorder %s773_s19, %s2427_s1  ;;  %p2432_p9 = scmp.lt.u32.totalorder %s773_s19, %s5705_s12 }
 0x1be   : > { %p2433_p12 = scmp.lt.u32.totalorder %s2431_s29, %s2427_s1  ;;  %p2435_p2 = scmp.lt.u32.totalorder %s2427_s1, %s773_s19 }
 0x1bf   : > { %p2429_p4 = pnand %p2428_p10, %p5697_p3 }
 0x1c0   : > { %p2434_p0 = por %p2433_p12, %p2432_p9 }
 0x1c1   : > { %p2430_p6 = pneg %p2429_p4 }
 0x1c2   : > { %p2436_p7 = por %p2435_p2, %p2434_p0 }
 0x1c4   : > { %p2437_p11 = pnand %p2436_p7, %p2430_p6 }
 0x1c6   : > { %2440 = shalt.err (!%p2437_p11)
}
 0x1c7   : > { %s2441_s25 = scalar_lea.vmem %s4239_s20, 32  ;;  %s3309_s9 = smov [#allocation16]  }
 0x1c8   : > { %p2442_p13 = scmp.ne.s32.totalorder %s4239_s20, %s2441_s25  ;;  %s2445_s15 = sshll.u32 %s3309_s9, 4  ;;  %s2446_s15 = int_to_ptr.vmem [resolvable:$false] %s2445_s15 }
 0x1c9   : > { %s2447_s18 = scalar_lea.vmem %s2446_s15, 64  ;;  %p2448_p10 = scmp.lt.s32.totalorder %s4239_s20, %s2446_s15 }
 0x1ca   : > { %p2443_p1 = pnand %p2442_p13, %p5697_p3  ;;  %p2449_p4 = scmp.lt.s32.totalorder %s2447_s18, %s2441_s25 }
 0x1cc   : > { %p2444_p5 = pneg %p2443_p1  ;;  %p2450_p9 = por %p2449_p4, %p2448_p10 }
 0x1ce   : > { %p2451_p12 = pnand %p2450_p9, %p2444_p5 }
 0x1d0   : > { %2454 = shalt.err (!%p2451_p12)
}
 0x1d1   : > { %s5706_s4 = sld [smem:[#allocation76_spill]]  ;;  %p5707_p6 = scmp.ne.s32.totalorder %s5637_s5, 0 }
 0x1d2   : > { %1868 = dma.hbm_to_vmem [thread:$0]  (%p5697_p3), %s773_s19, 32, %s4239_s20, %s5337_s7  }
 0x1d3   : > { %s1878_s22 = scalar_select %p5707_p6, [#allocation3], [#allocation42] }
 0x1d4   : > { %s1770_s1 = sshll.u32 %s4253_s24, 5  ;;  %s849_s14 = scalar_lea.vmem [#allocation22], %s4257_s26 }
 0x1d5   : > { %s4285_s13 = sshll.u32 %s849_s14, 4  ;;  %s5708_s30 = sld [smem:[#allocation155_spill]]  ;;  %s4334_s13 = int_to_ptr.vmem [resolvable:$true] %s4285_s13 }
 0x1d6   : > { %s5338_s9 = scalar_lea.sflag [#allocation20], %s4104_s11 }
 0x1d7   : > { %s889_s25 = sand.u32 1, %s5706_s4  }
 0x1db   : > { %s5709_s6 = smov %s5708_s30  ;;  %s4290_s0 = scalar_lea.hbm %s5708_s30, %s1770_s1 }
 0x1dc   : > { %s2455_s15 = scalar_lea.hbm %s4290_s0, 32  ;;  %s2459_s24 = scalar_lea.hbm %s5709_s6, 1024 }
 0x1dd   : > { %p2456_p0 = scmp.ne.s32.totalorder %s4290_s0, %s2455_s15  ;;  %p2460_p7 = scmp.lt.u32.totalorder %s4290_s0, %s5709_s6 }
 0x1de   : > { %p2461_p11 = scmp.lt.u32.totalorder %s2459_s24, %s2455_s15  ;;  %p2463_p1 = scmp.lt.u32.totalorder %s2455_s15, %s4290_s0 }
 0x1df   : > { %p2457_p3 = pnand %p2456_p0, %p5702_p8 }
 0x1e0   : > { %p2462_p13 = por %p2461_p11, %p2460_p7 }
 0x1e1   : > { %p2458_p2 = pneg %p2457_p3 }
 0x1e2   : > { %p2464_p5 = por %p2463_p1, %p2462_p13 }
 0x1e4   : > { %p2465_p10 = pnand %p2464_p5, %p2458_p2 }
 0x1e6   : > { %2468 = shalt.err (!%p2465_p10)
}
 0x1e7   : > { %s2469_s1 = scalar_lea.vmem %s4255_s28, 32  ;;  %s3310_s14 = smov [#allocation19]  }
 0x1e8   : > { %p2470_p4 = scmp.ne.s32.totalorder %s4255_s28, %s2469_s1  ;;  %s2473_s29 = sshll.u32 %s3310_s14, 4  ;;  %s2474_s29 = int_to_ptr.vmem [resolvable:$false] %s2473_s29 }
 0x1e9   : > { %s2475_s2 = scalar_lea.vmem %s2474_s29, 64  ;;  %p2476_p0 = scmp.lt.s32.totalorder %s4255_s28, %s2474_s29 }
 0x1ea   : > { %p2471_p9 = pnand %p2470_p4, %p5702_p8  ;;  %p2477_p3 = scmp.lt.s32.totalorder %s2475_s2, %s2469_s1 }
 0x1ec   : > { %p2472_p12 = pneg %p2471_p9  ;;  %p2478_p7 = por %p2477_p3, %p2476_p0 }
 0x1ee   : > { %p2479_p11 = pnand %p2478_p7, %p2472_p12 }
 0x1f0   : > { %2482 = shalt.err (!%p2479_p11)
}
 0x1f1   : > { %s5710_s30 = sld [smem:[#allocation109_spill]]  ;;  %s5711_s15 = sld [smem:[#allocation136_spill]] }
 0x1f2   : > { %s5712_s20 = sld [smem:[#allocation105_spill]]  ;;  %s5713_s19 = sadd.s32 11, %s3691_s27 }
 0x1f3   : > { %1874 = dma.hbm_to_vmem [thread:$0]  (%p5702_p8), %s4290_s0, 32, %s4255_s28, %s5338_s9  }
 0x1f4   : > { %s5982_s19 = smov (!%p5707_p6, %s5713_s19), 0  ;;  %s1780_s8 = sshll.u32 %s889_s25, 1 }
 0x1f5   : > { %s852_s26 = sld [smem:[%s1878_s22 + %s5982_s19]]  ;;  %s5715_s1 = sadd.s32 13, %s3691_s27 }
 0x1f6   : > { %s891_s14 = scalar_lea.vmem [#allocation25], %s1780_s8  ;;  %s5716_s19 = sld [smem:[#allocation157_spill]] }
 0x1f7   : > { %s5344_s24 = sand.u32 1, %s5710_s30   ;;  %p5714_p2 = scmp.ne.s32.totalorder %s5711_s15, 0 }
 0x1f8   : > { %s901_s28 = sshll.u32 %s891_s14, 4  ;;  %s4342_s4 = sshll.u32 %s5344_s24, 1  ;;  %s4338_s28 = int_to_ptr.vmem [resolvable:$true] %s901_s28 }
 0x1f9   : > { %s1884_s18 = scalar_select %p5714_p2, [#allocation3], [#allocation44] }
 0x1fa   : > { %s5984_s1 = smov (!%p5714_p2, %s5715_s1), 0  ;;  %s658_s29 = sand.u32 1, %s5712_s20  }
 0x1fb   : > { %s4336_s0 = sld [smem:[%s1884_s18 + %s5984_s1]]  ;;  %s1776_s25 = sshll.u32 %s852_s26, 5 }
 0x1fc   : > { %s5717_s7 = smov %s5716_s19  ;;  %s857_s9 = scalar_lea.hbm %s5716_s19, %s1776_s25 }
 0x1fd   : > { %s5343_s6 = scalar_lea.sflag [#allocation23], %s4104_s11  ;;  %s2483_s10 = scalar_lea.hbm %s857_s9, 32 }
 0x1fe   : > { %p2484_p8 = scmp.ne.s32.totalorder %s857_s9, %s2483_s10  ;;  %s2487_s1 = scalar_lea.hbm %s5717_s7, 1024 }
 0x1ff   : > { %p2488_p5 = scmp.lt.u32.totalorder %s857_s9, %s5717_s7  ;;  %p2489_p10 = scmp.lt.u32.totalorder %s2487_s1, %s2483_s10 }
 0x200   : > { %p2485_p13 = pnand %p2484_p8, %p5707_p6  ;;  %p2491_p9 = scmp.lt.u32.totalorder %s2483_s10, %s857_s9 }
 0x201   : > { %p2490_p4 = por %p2489_p10, %p2488_p5 }
 0x202   : > { %p2486_p1 = pneg %p2485_p13 }
 0x203   : > { %p2492_p12 = por %p2491_p9, %p2490_p4 }
 0x205   : > { %p2493_p0 = pnand %p2492_p12, %p2486_p1 }
 0x207   : > { %2496 = shalt.err (!%p2493_p0)
}
 0x208   : > { %s2497_s26 = scalar_lea.vmem %s4334_s13, 32  ;;  %s3311_s25 = smov [#allocation22]  }
 0x209   : > { %p2498_p3 = scmp.ne.s32.totalorder %s4334_s13, %s2497_s26  ;;  %s2501_s2 = sshll.u32 %s3311_s25, 4  ;;  %s2502_s2 = int_to_ptr.vmem [resolvable:$false] %s2501_s2 }
 0x20a   : > { %s2503_s12 = scalar_lea.vmem %s2502_s2, 64  ;;  %p2504_p8 = scmp.lt.s32.totalorder %s4334_s13, %s2502_s2 }
 0x20b   : > { %p2499_p7 = pnand %p2498_p3, %p5707_p6  ;;  %p2505_p13 = scmp.lt.s32.totalorder %s2503_s12, %s2497_s26 }
 0x20d   : > { %p2500_p11 = pneg %p2499_p7  ;;  %p2506_p5 = por %p2505_p13, %p2504_p8 }
 0x20f   : > { %p2507_p10 = pnand %p2506_p5, %p2500_p11 }
 0x211   : > { %2510 = shalt.err (!%p2507_p10)
}
 0x212   : > { %s5718_s10 = sld [smem:[#allocation111_spill]]  ;;  %s1782_s19 = sshll.u32 %s4336_s0, 5 }
 0x213   : > { %1880 = dma.hbm_to_vmem [thread:$0]  (%p5707_p6), %s857_s9, 32, %s4334_s13, %s5343_s6  }
 0x214   : > { %s619_s8 = scalar_lea.vmem [#allocation4], %s4342_s4  ;;  %s5720_s26 = sld [smem:[#allocation159_spill]] }
 0x215   : > { %s4371_s18 = sshll.u32 %s619_s8, 4  ;;  %s4380_s25 = sshll.u32 %s658_s29, 1  ;;  %s4410_s18 = int_to_ptr.vmem [resolvable:$true] %s4371_s18 }
 0x216   : > { %s5342_s2 = scalar_lea.sflag [#allocation26], %s4104_s11 }
 0x218   : > { %p5719_p1 = scmp.ne.s32.totalorder %s5718_s10, 0 }
 0x21a   : > { %s1845_s22 = scalar_select %p5719_p1, [#allocation3], [#allocation31] }
 0x21b   : > { %s5721_s12 = smov %s5720_s26  ;;  %s4376_s5 = scalar_lea.hbm %s5720_s26, %s1782_s19 }
 0x21c   : > { %s2511_s13 = scalar_lea.hbm %s4376_s5, 32  ;;  %s2515_s4 = scalar_lea.hbm %s5721_s12, 1024 }
 0x21d   : > { %p2512_p6 = scmp.ne.s32.totalorder %s4376_s5, %s2511_s13  ;;  %p2516_p12 = scmp.lt.u32.totalorder %s4376_s5, %s5721_s12 }
 0x21e   : > { %p2517_p0 = scmp.lt.u32.totalorder %s2515_s4, %s2511_s13  ;;  %p2519_p7 = scmp.lt.u32.totalorder %s2511_s13, %s4376_s5 }
 0x21f   : > { %p2513_p4 = pnand %p2512_p6, %p5714_p2 }
 0x220   : > { %p2518_p3 = por %p2517_p0, %p2516_p12 }
 0x221   : > { %p2514_p9 = pneg %p2513_p4 }
 0x222   : > { %p2520_p11 = por %p2519_p7, %p2518_p3 }
 0x224   : > { %p2521_p8 = pnand %p2520_p11, %p2514_p9 }
 0x226   : > { %2524 = shalt.err (!%p2521_p8)
}
 0x227   : > { %s2525_s20 = scalar_lea.vmem %s4338_s28, 32  ;;  %s3312_s29 = smov [#allocation25]  }
 0x228   : > { %p2526_p13 = scmp.ne.s32.totalorder %s4338_s28, %s2525_s20  ;;  %s2529_s1 = sshll.u32 %s3312_s29, 4  ;;  %s2530_s1 = int_to_ptr.vmem [resolvable:$false] %s2529_s1 }
 0x229   : > { %s2531_s14 = scalar_lea.vmem %s2530_s1, 64  ;;  %p2532_p6 = scmp.lt.s32.totalorder %s4338_s28, %s2530_s1 }
 0x22a   : > { %p2527_p5 = pnand %p2526_p13, %p5714_p2  ;;  %p2533_p4 = scmp.lt.s32.totalorder %s2531_s14, %s2525_s20 }
 0x22c   : > { %p2528_p10 = pneg %p2527_p5  ;;  %p2534_p12 = por %p2533_p4, %p2532_p6 }
 0x22e   : > { %p2535_p0 = pnand %p2534_p12, %p2528_p10 }
 0x230   : > { %2538 = shalt.err (!%p2535_p0)
}
 0x231   : > { %s5722_s26 = sld [smem:[#allocation101_spill]]  ;;  %s5723_s13 = sld [smem:[#allocation115_spill]] }
 0x232   : > { %s5724_s9 = sld [smem:[#allocation120_spill]]  ;;  %s5726_s19 = sadd.s32 2, %s3691_s27 }
 0x233   : > { %1886 = dma.hbm_to_vmem [thread:$0]  (%p5714_p2), %s4376_s5, 32, %s4338_s28, %s5342_s2  }
 0x234   : > { %s1846_s0 = scalar_select %p5719_p1, %s3691_s27, 0 }
 0x235   : > { %s660_s20 = scalar_lea.vmem [#allocation9], %s4380_s25 }
 0x236   : > { %s621_s15 = sld [smem:[%s1845_s22 + %s1846_s0]]  ;;  %s670_s29 = sshll.u32 %s660_s20, 4  ;;  %s4427_s29 = int_to_ptr.vmem [resolvable:$true] %s670_s29 }
 0x237   : > { %s700_s4 = sand.u32 1, %s5722_s26   ;;  %p5725_p9 = scmp.ne.s32.totalorder %s5723_s13, 0 }
 0x238   : > { %s1753_s1 = sshll.u32 %s700_s4, 1  ;;  %p5727_p2 = scmp.ne.s32.totalorder %s5724_s9, 0 }
 0x239   : > { %s1851_s8 = scalar_select %p5725_p9, [#allocation3], [#allocation33] }
 0x23a   : > { %s5986_s19 = smov (!%p5725_p9, %s5726_s19), 0  ;;  %s5728_s22 = sld [smem:[#allocation146_spill]] }
 0x23b   : > { %s4423_s14 = sld [smem:[%s1851_s8 + %s5986_s19]]  ;;  %s702_s0 = scalar_lea.vmem [#allocation12], %s1753_s1 }
 0x23c   : > { %s1743_s5 = sshll.u32 %s621_s15, 5  ;;  %s4434_s25 = sshll.u32 %s702_s0, 4  ;;  %s4492_s25 = int_to_ptr.vmem [resolvable:$true] %s4434_s25 }
 0x23d   : > { %s5730_s4 = sand.u32 1, %s5710_s30  }
 0x23e   : > { %s616_s8 = scalar_lea.sflag [#allocation5], %s5730_s4 }
 0x240   : > { %s5729_s24 = smov %s5728_s22  ;;  %s4432_s26 = scalar_lea.hbm %s5728_s22, %s1743_s5 }
 0x241   : > { %s2539_s19 = scalar_lea.hbm %s4432_s26, 32  ;;  %s2543_s6 = scalar_lea.hbm %s5729_s24, 1024 }
 0x242   : > { %p2540_p3 = scmp.ne.s32.totalorder %s4432_s26, %s2539_s19  ;;  %p2544_p8 = scmp.lt.u32.totalorder %s4432_s26, %s5729_s24 }
 0x243   : > { %p2545_p13 = scmp.lt.u32.totalorder %s2543_s6, %s2539_s19  ;;  %p2547_p10 = scmp.lt.u32.totalorder %s2539_s19, %s4432_s26 }
 0x244   : > { %p2541_p7 = pnand %p2540_p3, %p5719_p1 }
 0x245   : > { %p2546_p5 = por %p2545_p13, %p2544_p8 }
 0x246   : > { %p2542_p11 = pneg %p2541_p7 }
 0x247   : > { %p2548_p6 = por %p2547_p10, %p2546_p5 }
 0x249   : > { %p2549_p4 = pnand %p2548_p6, %p2542_p11 }
 0x24b   : > { %2552 = shalt.err (!%p2549_p4)
}
 0x24c   : > { %s2553_s30 = scalar_lea.vmem %s4410_s18, 32  ;;  %s3313_s1 = smov [#allocation4]  }
 0x24d   : > { %p2554_p12 = scmp.ne.s32.totalorder %s4410_s18, %s2553_s30  ;;  %s2557_s22 = sshll.u32 %s3313_s1, 4  ;;  %s2558_s22 = int_to_ptr.vmem [resolvable:$false] %s2557_s22 }
 0x24e   : > { %s2559_s0 = scalar_lea.vmem %s2558_s22, 64  ;;  %p2560_p7 = scmp.lt.s32.totalorder %s4410_s18, %s2558_s22 }
 0x24f   : > { %p2555_p0 = pnand %p2554_p12, %p5719_p1  ;;  %p2561_p9 = scmp.lt.s32.totalorder %s2559_s0, %s2553_s30 }
 0x251   : > { %p2556_p3 = pneg %p2555_p0  ;;  %p2562_p8 = por %p2561_p9, %p2560_p7 }
 0x253   : > { %p2563_p13 = pnand %p2562_p8, %p2556_p3 }
 0x255   : > { %2566 = shalt.err (!%p2563_p13)
}
 0x256   : > { %s5731_s4 = sld [smem:[#allocation100_spill]]  ;;  %s5732_s19 = sadd.s32 4, %s3691_s27 }
 0x257   : > { %1847 = dma.hbm_to_vmem [thread:$0]  (%p5719_p1), %s4432_s26, 32, %s4410_s18, %s616_s8  }
 0x258   : > { %s5988_s19 = smov (!%p5727_p2, %s5732_s19), 0  ;;  %s1749_s15 = sshll.u32 %s4423_s14, 5 }
 0x259   : > { %s5733_s5 = sld [smem:[#allocation148_spill]]  ;;  %p5736_p11 = scmp.ne.s32.totalorder %s5723_s13, 0 }
 0x25a   : > { %s5735_s10 = scalar_select %p5727_p2, [#allocation3], [#allocation35] }
 0x25c   : > { %s742_s20 = sand.u32 1, %s5731_s4   ;;  %s4471_s1 = sld [smem:[%s5735_s10 + %s5988_s19]] }
 0x25f   : > { %s5734_s28 = smov %s5733_s5  ;;  %s668_s30 = scalar_lea.hbm %s5733_s5, %s1749_s15 }
 0x260   : > { %s2567_s22 = scalar_lea.hbm %s668_s30, 32  ;;  %s2571_s26 = scalar_lea.hbm %s5734_s28, 1024 }
 0x261   : > { %p2568_p9 = scmp.ne.s32.totalorder %s668_s30, %s2567_s22  ;;  %p2572_p1 = scmp.lt.u32.totalorder %s668_s30, %s5734_s28 }
 0x262   : > { %p2573_p6 = scmp.lt.u32.totalorder %s2571_s26, %s2567_s22  ;;  %p2575_p12 = scmp.lt.u32.totalorder %s2567_s22, %s668_s30 }
 0x263   : > { %p2569_p5 = pnand %p2568_p9, %p5736_p11 }
 0x264   : > { %p2574_p4 = por %p2573_p6, %p2572_p1 }
 0x265   : > { %p2570_p10 = pneg %p2569_p5 }
 0x266   : > { %p2576_p0 = por %p2575_p12, %p2574_p4 }
 0x268   : > { %p2577_p3 = pnand %p2576_p0, %p2570_p10 }
 0x26a   : > { %2580 = shalt.err (!%p2577_p3)
}
 0x26b   : > { %s2581_s19 = scalar_lea.vmem %s4427_s29, 32  ;;  %s3314_s15 = smov [#allocation9]  }
 0x26c   : > { %p2582_p7 = scmp.ne.s32.totalorder %s4427_s29, %s2581_s19  ;;  %s2585_s6 = sshll.u32 %s3314_s15, 4  ;;  %s2586_s6 = int_to_ptr.vmem [resolvable:$false] %s2585_s6 }
 0x26d   : > { %s2587_s2 = scalar_lea.vmem %s2586_s6, 64  ;;  %p2588_p9 = scmp.lt.s32.totalorder %s4427_s29, %s2586_s6 }
 0x26e   : > { %p2583_p8 = pnand %p2582_p7, %p5736_p11  ;;  %p2589_p5 = scmp.lt.s32.totalorder %s2587_s2, %s2581_s19 }
 0x270   : > { %p2584_p13 = pneg %p2583_p8  ;;  %p2590_p1 = por %p2589_p5, %p2588_p9 }
 0x272   : > { %p2591_p6 = pnand %p2590_p1, %p2584_p13 }
 0x274   : > { %2594 = shalt.err (!%p2591_p6)
}
 0x275   : > { %s5737_s5 = scalar_lea.sflag [#allocation8], %s4104_s11  ;;  %s5738_s10 = sld [smem:[#allocation98_spill]] }
 0x276   : > { %s5739_s22 = sld [smem:[#allocation124_spill]]  ;;  %s4496_s0 = sshll.u32 %s742_s20, 1 }
 0x277   : > { %1853 = dma.hbm_to_vmem [thread:$0]  (%p5736_p11), %s668_s30, 32, %s4427_s29, %s5737_s5  }
 0x278   : > { %s5741_s26 = sadd.s32 6, %s3691_s27  ;;  %s1755_s8 = sshll.u32 %s4471_s1, 5 }
 0x279   : > { %s5742_s6 = sld [smem:[#allocation150_spill]] }
 0x27b   : > { %s784_s18 = sand.u32 1, %s5738_s10  }
 0x27c   : > { %p5740_p10 = scmp.ne.s32.totalorder %s5739_s22, 0  ;;  %s4506_s14 = sshll.u32 %s784_s18, 1 }
 0x27e   : > { %s1863_s13 = scalar_select %p5740_p10, [#allocation3], [#allocation37] }
 0x27f   : > { %s5990_s26 = smov (!%p5740_p10, %s5741_s26), 0  ;;  %s710_s2 = scalar_lea.hbm %s5742_s6, %s1755_s8 }
 0x280   : > { %s4511_s7 = sld [smem:[%s1863_s13 + %s5990_s26]]  ;;  %s2595_s29 = scalar_lea.hbm %s710_s2, 32 }
 0x281   : > { %p2596_p11 = scmp.ne.s32.totalorder %s710_s2, %s2595_s29  ;;  %s2599_s30 = scalar_lea.hbm %s5742_s6, 1024 }
 0x282   : > { %p2600_p0 = scmp.lt.u32.totalorder %s710_s2, %s5742_s6  ;;  %p2601_p3 = scmp.lt.u32.totalorder %s2599_s30, %s2595_s29 }
 0x283   : > { %p2597_p4 = pnand %p2596_p11, %p5727_p2  ;;  %p2603_p8 = scmp.lt.u32.totalorder %s2595_s29, %s710_s2 }
 0x284   : > { %p2602_p7 = por %p2601_p3, %p2600_p0 }
 0x285   : > { %p2598_p12 = pneg %p2597_p4 }
 0x286   : > { %p2604_p13 = por %p2603_p8, %p2602_p7 }
 0x288   : > { %p2605_p9 = pnand %p2604_p13, %p2598_p12 }
 0x28a   : > { %2608 = shalt.err (!%p2605_p9)
}
 0x28b   : > { %s2609_s1 = scalar_lea.vmem %s4492_s25, 32  ;;  %s3315_s18 = smov [#allocation12]  }
 0x28c   : > { %p2610_p5 = scmp.ne.s32.totalorder %s4492_s25, %s2609_s1  ;;  %s2613_s13 = sshll.u32 %s3315_s18, 4  ;;  %s2614_s13 = int_to_ptr.vmem [resolvable:$false] %s2613_s13 }
 0x28d   : > { %s2615_s26 = scalar_lea.vmem %s2614_s13, 64  ;;  %p2616_p11 = scmp.lt.s32.totalorder %s4492_s25, %s2614_s13 }
 0x28e   : > { %p2611_p1 = pnand %p2610_p5, %p5727_p2  ;;  %p2617_p4 = scmp.lt.s32.totalorder %s2615_s26, %s2609_s1 }
 0x290   : > { %p2612_p6 = pneg %p2611_p1  ;;  %p2618_p0 = por %p2617_p4, %p2616_p11 }
 0x292   : > { %p2619_p3 = pnand %p2618_p0, %p2612_p6 }
 0x294   : > { %2622 = shalt.err (!%p2619_p3)
}
 0x295   : > { %s5743_s8 = scalar_lea.sflag [#allocation11], %s4104_s11  ;;  %s5744_s19 = sld [smem:[#allocation128_spill]] }
 0x296   : > { %s5745_s15 = sld [smem:[#allocation85_spill]]  ;;  %s744_s29 = scalar_lea.vmem [#allocation15], %s4496_s0 }
 0x297   : > { %1859 = dma.hbm_to_vmem [thread:$0]  (%p5727_p2), %s710_s2, 32, %s4492_s25, %s5743_s8  }
 0x298   : > { %s754_s4 = sshll.u32 %s744_s29, 4  ;;  %s5747_s30 = sadd.s32 8, %s3691_s27  ;;  %s4538_s4 = int_to_ptr.vmem [resolvable:$true] %s754_s4 }
 0x299   : > { %s1761_s5 = sshll.u32 %s4511_s7, 5  ;;  %s5748_s13 = sld [smem:[#allocation152_spill]] }
 0x29a   : > { %s786_s25 = scalar_lea.vmem [#allocation18], %s4506_s14 }
 0x29b   : > { %p5746_p12 = scmp.ne.s32.totalorder %s5744_s19, 0  ;;  %s796_s0 = sshll.u32 %s786_s25, 4  ;;  %s4576_s0 = int_to_ptr.vmem [resolvable:$true] %s796_s0 }
 0x29c   : > { %s826_s9 = sand.u32 1, %s5745_s15  }
 0x29d   : > { %s1869_s20 = scalar_select %p5746_p12, [#allocation3], [#allocation39] }
 0x29e   : > { %s5992_s30 = smov (!%p5746_p12, %s5747_s30), 0 }
 0x29f   : > { %s4542_s10 = sld [smem:[%s1869_s20 + %s5992_s30]]  ;;  %s5749_s6 = smov %s5748_s13 }
 0x2a0   : > { %s4547_s26 = scalar_lea.hbm %s5748_s13, %s1761_s5  ;;  %s2627_s29 = scalar_lea.hbm %s5749_s6, 1024 }
 0x2a1   : > { %s2623_s2 = scalar_lea.hbm %s4547_s26, 32  ;;  %p2628_p13 = scmp.lt.u32.totalorder %s4547_s26, %s5749_s6 }
 0x2a2   : > { %p2624_p2 = scmp.ne.s32.totalorder %s4547_s26, %s2623_s2  ;;  %p2629_p9 = scmp.lt.u32.totalorder %s2627_s29, %s2623_s2 }
 0x2a3   : > { %p2631_p1 = scmp.lt.u32.totalorder %s2623_s2, %s4547_s26 }
 0x2a4   : > { %p2625_p7 = pnand %p2624_p2, %p5740_p10  ;;  %p2630_p5 = por %p2629_p9, %p2628_p13 }
 0x2a6   : > { %p2626_p8 = pneg %p2625_p7  ;;  %p2632_p6 = por %p2631_p1, %p2630_p5 }
 0x2a8   : > { %p2633_p11 = pnand %p2632_p6, %p2626_p8 }
 0x2aa   : > { %2636 = shalt.err (!%p2633_p11)
}
 0x2ab   : > { %s2637_s14 = scalar_lea.vmem %s4538_s4, 32  ;;  %s3316_s5 = smov [#allocation15]  }
 0x2ac   : > { %p2638_p4 = scmp.ne.s32.totalorder %s4538_s4, %s2637_s14  ;;  %s2641_s1 = sshll.u32 %s3316_s5, 4  ;;  %s2642_s1 = int_to_ptr.vmem [resolvable:$false] %s2641_s1 }
 0x2ad   : > { %s2643_s18 = scalar_lea.vmem %s2642_s1, 64  ;;  %p2644_p2 = scmp.lt.s32.totalorder %s4538_s4, %s2642_s1 }
 0x2ae   : > { %p2639_p0 = pnand %p2638_p4, %p5740_p10  ;;  %p2645_p7 = scmp.lt.s32.totalorder %s2643_s18, %s2637_s14 }
 0x2b0   : > { %p2640_p3 = pneg %p2639_p0  ;;  %p2646_p13 = por %p2645_p7, %p2644_p2 }
 0x2b2   : > { %p2647_p9 = pnand %p2646_p13, %p2640_p3 }
 0x2b4   : > { %2650 = shalt.err (!%p2647_p9)
}
 0x2b5   : > { %s5750_s13 = scalar_lea.sflag [#allocation14], %s4104_s11  ;;  %s5751_s25 = sld [smem:[#allocation79_spill]] }
 0x2b6   : > { %s5752_s2 = sld [smem:[#allocation131_spill]]  ;;  %s1771_s8 = sshll.u32 %s826_s9, 1 }
 0x2b7   : > { %1865 = dma.hbm_to_vmem [thread:$0]  (%p5740_p10), %s4547_s26, 32, %s4538_s4, %s5750_s13  }
 0x2b8   : > { %s1767_s20 = sshll.u32 %s4542_s10, 5  ;;  %s5754_s5 = sld [smem:[#allocation154_spill]] }
 0x2b9   : > { %s828_s4 = scalar_lea.vmem [#allocation21], %s1771_s8 }
 0x2ba   : > { %s838_s15 = sshll.u32 %s828_s4, 4  ;;  %s4615_s15 = int_to_ptr.vmem [resolvable:$true] %s838_s15 }
 0x2bb   : > { %s868_s7 = sand.u32 1, %s5751_s25  }
 0x2bc   : > { %p5753_p8 = scmp.ne.s32.totalorder %s5752_s2, 0  ;;  %s4581_s30 = sshll.u32 %s868_s7, 1 }
 0x2be   : > { %s1875_s29 = scalar_select %p5753_p8, [#allocation3], [#allocation41] }
 0x2bf   : > { %s5755_s6 = smov %s5754_s5  ;;  %s4586_s1 = scalar_lea.hbm %s5754_s5, %s1767_s20 }
 0x2c0   : > { %s2651_s9 = scalar_lea.hbm %s4586_s1, 32  ;;  %s2655_s18 = scalar_lea.hbm %s5755_s6, 1024 }
 0x2c1   : > { %p2652_p10 = scmp.ne.s32.totalorder %s4586_s1, %s2651_s9  ;;  %p2656_p6 = scmp.lt.u32.totalorder %s4586_s1, %s5755_s6 }
 0x2c2   : > { %p2657_p11 = scmp.lt.u32.totalorder %s2655_s18, %s2651_s9  ;;  %p2659_p0 = scmp.lt.u32.totalorder %s2651_s9, %s4586_s1 }
 0x2c3   : > { %p2653_p5 = pnand %p2652_p10, %p5746_p12 }
 0x2c4   : > { %p2658_p4 = por %p2657_p11, %p2656_p6 }
 0x2c5   : > { %p2654_p1 = pneg %p2653_p5 }
 0x2c6   : > { %p2660_p3 = por %p2659_p0, %p2658_p4 }
 0x2c8   : > { %p2661_p2 = pnand %p2660_p3, %p2654_p1 }
 0x2ca   : > { %2664 = shalt.err (!%p2661_p2)
}
 0x2cb   : > { %s2665_s8 = scalar_lea.vmem %s4576_s0, 32  ;;  %s3317_s7 = smov [#allocation18]  }
 0x2cc   : > { %p2666_p7 = scmp.ne.s32.totalorder %s4576_s0, %s2665_s8  ;;  %s2669_s20 = sshll.u32 %s3317_s7, 4  ;;  %s2670_s20 = int_to_ptr.vmem [resolvable:$false] %s2669_s20 }
 0x2cd   : > { %s2671_s22 = scalar_lea.vmem %s2670_s20, 64  ;;  %p2672_p10 = scmp.lt.s32.totalorder %s4576_s0, %s2670_s20 }
 0x2ce   : > { %p2667_p13 = pnand %p2666_p7, %p5746_p12  ;;  %p2673_p5 = scmp.lt.s32.totalorder %s2671_s22, %s2665_s8 }
 0x2d0   : > { %p2668_p9 = pneg %p2667_p13  ;;  %p2674_p6 = por %p2673_p5, %p2672_p10 }
 0x2d2   : > { %p2675_p11 = pnand %p2674_p6, %p2668_p9 }
 0x2d4   : > { %2678 = shalt.err (!%p2675_p11)
}
 0x2d5   : > { %s5756_s14 = scalar_lea.sflag [#allocation17], %s4104_s11  ;;  %s5757_s5 = sld [smem:[#allocation73_spill]] }
 0x2d6   : > { %s5758_s4 = sld [smem:[#allocation134_spill]]  ;;  %s5759_s9 = sadd.s32 10, %s3691_s27 }
 0x2d7   : > { %1871 = dma.hbm_to_vmem [thread:$0]  (%p5746_p12), %s4586_s1, 32, %s4576_s0, %s5756_s14  }
 0x2d8   : > { %s5994_s9 = smov (!%p5753_p8, %s5759_s9), 0  ;;  %s5761_s18 = sadd.s32 12, %s3691_s27 }
 0x2d9   : > { %s831_s19 = sld [smem:[%s1875_s29 + %s5994_s9]]  ;;  %s870_s13 = scalar_lea.vmem [#allocation24], %s4581_s30 }
 0x2da   : > { %s880_s25 = sshll.u32 %s870_s13, 4  ;;  %p5762_p12 = scmp.ne.s32.totalorder %s5667_s17, 0  ;;  %s4632_s25 = int_to_ptr.vmem [resolvable:$true] %s880_s25 }
 0x2db   : > { %s910_s26 = sand.u32 1, %s5757_s5   ;;  %s5763_s29 = sld [smem:[#allocation156_spill]] }
 0x2dc   : > { %p5760_p1 = scmp.ne.s32.totalorder %s5758_s4, 0  ;;  %s1783_s8 = sshll.u32 %s910_s26, 1 }
 0x2dd   : > { %s1887_s0 = scalar_select %p5762_p12, [#allocation3], [#allocation45] }
 0x2de   : > { %s1881_s10 = scalar_select %p5760_p1, [#allocation3], [#allocation43] }
 0x2df   : > { %s5996_s18 = smov (!%p5760_p1, %s5761_s18), 0  ;;  %s1773_s1 = sshll.u32 %s831_s19, 5 }
 0x2e0   : > { %s4628_s7 = sld [smem:[%s1881_s10 + %s5996_s18]]  ;;  %s912_s5 = scalar_lea.vmem [#allocation27], %s1783_s8 }
 0x2e1   : > { %s5764_s6 = smov %s5763_s29  ;;  %s4637_s14 = scalar_lea.hbm %s5763_s29, %s1773_s1 }
 0x2e2   : > { %s4639_s30 = sshll.u32 %s912_s5, 4  ;;  %s2679_s9 = scalar_lea.hbm %s4637_s14, 32  ;;  %s4697_s30 = int_to_ptr.vmem [resolvable:$true] %s4639_s30 }
 0x2e3   : > { %p2680_p4 = scmp.ne.s32.totalorder %s4637_s14, %s2679_s9  ;;  %s2683_s10 = scalar_lea.hbm %s5764_s6, 1024 }
 0x2e4   : > { %p2684_p2 = scmp.lt.u32.totalorder %s4637_s14, %s5764_s6  ;;  %p2685_p7 = scmp.lt.u32.totalorder %s2683_s10, %s2679_s9 }
 0x2e5   : > { %p2681_p0 = pnand %p2680_p4, %p5753_p8  ;;  %p2687_p9 = scmp.lt.u32.totalorder %s2679_s9, %s4637_s14 }
 0x2e6   : > { %p2686_p13 = por %p2685_p7, %p2684_p2 }
 0x2e7   : > { %p2682_p3 = pneg %p2681_p0 }
 0x2e8   : > { %p2688_p10 = por %p2687_p9, %p2686_p13 }
 0x2ea   : > { %p2689_p5 = pnand %p2688_p10, %p2682_p3 }
 0x2ec   : > { %2692 = shalt.err (!%p2689_p5)
}
 0x2ed   : > { %s2693_s8 = scalar_lea.vmem %s4615_s15, 32  ;;  %s3318_s1 = smov [#allocation21]  }
 0x2ee   : > { %p2694_p6 = scmp.ne.s32.totalorder %s4615_s15, %s2693_s8  ;;  %s2697_s20 = sshll.u32 %s3318_s1, 4  ;;  %s2698_s20 = int_to_ptr.vmem [resolvable:$false] %s2697_s20 }
 0x2ef   : > { %s2699_s22 = scalar_lea.vmem %s2698_s20, 64  ;;  %p2700_p0 = scmp.lt.s32.totalorder %s4615_s15, %s2698_s20 }
 0x2f0   : > { %p2695_p11 = pnand %p2694_p6, %p5753_p8  ;;  %p2701_p1 = scmp.lt.s32.totalorder %s2699_s22, %s2693_s8 }
 0x2f2   : > { %p2696_p4 = pneg %p2695_p11  ;;  %p2702_p2 = por %p2701_p1, %p2700_p0 }
 0x2f4   : > { %p2703_p7 = pnand %p2702_p2, %p2696_p4 }
 0x2f6   : > { %2706 = shalt.err (!%p2703_p7)
}
 0x2f7   : > { %s5765_s29 = scalar_lea.sflag [#allocation20], %s4104_s11  ;;  %s5766_s5 = sld [smem:[#allocation70_spill]] }
 0x2f8   : > { %1877 = dma.hbm_to_vmem [thread:$0]  (%p5753_p8), %s4637_s14, 32, %s4615_s15, %s5765_s29  }
 0x2f9   : > { %s5767_s9 = sadd.s32 14, %s3691_s27  ;;  %s1779_s19 = sshll.u32 %s4628_s7, 5 }
 0x2fa   : > { %s5998_s9 = smov (!%p5762_p12, %s5767_s9), 0  ;;  %s5768_s13 = sld [smem:[#allocation158_spill]] }
 0x2fb   : > { %s4676_s1 = sld [smem:[%s1887_s0 + %s5998_s9]]  ;;  %p5770_p3 = scmp.ne.s32.totalorder %s5758_s4, 0 }
 0x2fd   : > { %s929_s26 = sand.u32 1, %s5766_s5  }
 0x300   : > { %s5769_s8 = smov %s5768_s13  ;;  %s878_s2 = scalar_lea.hbm %s5768_s13, %s1779_s19 }
 0x301   : > { %s2707_s20 = scalar_lea.hbm %s878_s2, 32  ;;  %s2711_s14 = scalar_lea.hbm %s5769_s8, 1024 }
 0x302   : > { %p2708_p1 = scmp.ne.s32.totalorder %s878_s2, %s2707_s20  ;;  %p2712_p8 = scmp.lt.u32.totalorder %s878_s2, %s5769_s8 }
 0x303   : > { %p2713_p10 = scmp.lt.u32.totalorder %s2711_s14, %s2707_s20  ;;  %p2715_p6 = scmp.lt.u32.totalorder %s2707_s20, %s878_s2 }
 0x304   : > { %p2709_p13 = pnand %p2708_p1, %p5770_p3 }
 0x305   : > { %p2714_p5 = por %p2713_p10, %p2712_p8 }
 0x306   : > { %p2710_p9 = pneg %p2709_p13 }
 0x307   : > { %p2716_p11 = por %p2715_p6, %p2714_p5 }
 0x309   : > { %p2717_p4 = pnand %p2716_p11, %p2710_p9 }
 0x30b   : > { %2720 = shalt.err (!%p2717_p4)
}
 0x30c   : > { %s2721_s0 = scalar_lea.vmem %s4632_s25, 32  ;;  %s3319_s9 = smov [#allocation24]  }
 0x30d   : > { %p2722_p0 = scmp.ne.s32.totalorder %s4632_s25, %s2721_s0  ;;  %s2725_s19 = sshll.u32 %s3319_s9, 4  ;;  %s2726_s19 = int_to_ptr.vmem [resolvable:$false] %s2725_s19 }
 0x30e   : > { %s2727_s10 = scalar_lea.vmem %s2726_s19, 64  ;;  %p2728_p1 = scmp.lt.s32.totalorder %s4632_s25, %s2726_s19 }
 0x30f   : > { %p2723_p2 = pnand %p2722_p0, %p5770_p3  ;;  %p2729_p13 = scmp.lt.s32.totalorder %s2727_s10, %s2721_s0 }
 0x311   : > { %p2724_p7 = pneg %p2723_p2  ;;  %p2730_p8 = por %p2729_p13, %p2728_p1 }
 0x313   : > { %p2731_p10 = pnand %p2730_p8, %p2724_p7 }
 0x315   : > { %2734 = shalt.err (!%p2731_p10)
}
 0x316   : > { %s5771_s18 = scalar_lea.sflag [#allocation23], %s4104_s11  ;;  %s4701_s13 = sshll.u32 %s929_s26, 1 }
 0x317   : > { %1883 = dma.hbm_to_vmem [thread:$0]  (%p5770_p3), %s878_s2, 32, %s4632_s25, %s5771_s18  }
 0x318   : > { %p5772_p9 = scmp.ne.s32.totalorder %s5675_s3, 0  ;;  %s5773_s22 = sadd.s32 15, %s3691_s27 }
 0x319   : > { %s1785_s4 = sshll.u32 %s4676_s1, 5  ;;  %s5774_s29 = sld [smem:[#allocation160_spill]] }
 0x31a   : > { %s1890_s20 = scalar_select %p5772_p9, [#allocation3], [#allocation46] }
 0x31b   : > { %s6000_s22 = smov (!%p5772_p9, %s5773_s22), 0 }
 0x31c   : > { %s4713_s9 = sld [smem:[%s1890_s20 + %s6000_s22]] }
 0x31f   : > { %s5775_s7 = smov %s5774_s29  ;;  %s920_s0 = scalar_lea.hbm %s5774_s29, %s1785_s4 }
 0x320   : > { %s2735_s19 = scalar_lea.hbm %s920_s0, 32  ;;  %s2739_s10 = scalar_lea.hbm %s5775_s7, 1024 }
 0x321   : > { %p2736_p5 = scmp.ne.s32.totalorder %s920_s0, %s2735_s19  ;;  %p2740_p11 = scmp.lt.u32.totalorder %s920_s0, %s5775_s7 }
 0x322   : > { %p2741_p4 = scmp.lt.u32.totalorder %s2739_s10, %s2735_s19  ;;  %p2743_p2 = scmp.lt.u32.totalorder %s2735_s19, %s920_s0 }
 0x323   : > { %p2737_p3 = pnand %p2736_p5, %p5762_p12 }
 0x324   : > { %p2742_p0 = por %p2741_p4, %p2740_p11 }
 0x325   : > { %p2738_p6 = pneg %p2737_p3 }
 0x326   : > { %p2744_p7 = por %p2743_p2, %p2742_p0 }
 0x328   : > { %p2745_p1 = pnand %p2744_p7, %p2738_p6 }
 0x32a   : > { %2748 = shalt.err (!%p2745_p1)
}
 0x32b   : > { %s2749_s1 = scalar_lea.vmem %s4697_s30, 32  ;;  %s3320_s20 = smov [#allocation27]  }
 0x32c   : > { %p2750_p13 = scmp.ne.s32.totalorder %s4697_s30, %s2749_s1  ;;  %s2753_s22 = sshll.u32 %s3320_s20, 4  ;;  %s2754_s22 = int_to_ptr.vmem [resolvable:$false] %s2753_s22 }
 0x32d   : > { %s2755_s4 = scalar_lea.vmem %s2754_s22, 64  ;;  %p2756_p5 = scmp.lt.s32.totalorder %s4697_s30, %s2754_s22 }
 0x32e   : > { %p2751_p8 = pnand %p2750_p13, %p5762_p12  ;;  %p2757_p3 = scmp.lt.s32.totalorder %s2755_s4, %s2749_s1 }
 0x330   : > { %p2752_p10 = pneg %p2751_p8  ;;  %p2758_p11 = por %p2757_p3, %p2756_p5 }
 0x332   : > { %p2759_p4 = pnand %p2758_p11, %p2752_p10 }
 0x334   : > { %2762 = shalt.err (!%p2759_p4)
}
 0x335   : > { %s5776_s15 = scalar_lea.sflag [#allocation26], %s4104_s11  ;;  %s933_s14 = scalar_lea.vmem [#allocation28], %s4701_s13 }
 0x336   : > { %1889 = dma.hbm_to_vmem [thread:$0]  (%p5762_p12), %s920_s0, 32, %s4697_s30, %s5776_s15  }
 0x337   : > { %s943_s29 = sshll.u32 %s933_s14, 4  ;;  %s1788_s19 = sshll.u32 %s4713_s9, 5  ;;  %s4734_s29 = int_to_ptr.vmem [resolvable:$true] %s943_s29 }
 0x338   : > { %s5777_s10 = sld [smem:[#allocation161_spill]]  ;;  %s930_s27 = scalar_lea.sflag [#allocation29], %s929_s26 }
 0x33e   : > { %s941_s18 = scalar_lea.hbm %s5777_s10, %s1788_s19  ;;  %s2767_s30 = scalar_lea.hbm %s5777_s10, 1024 }
 0x33f   : > { %s2763_s17 = scalar_lea.hbm %s941_s18, 32  ;;  %p2768_p12 = scmp.lt.u32.totalorder %s941_s18, %s5777_s10 }
 0x340   : > { %p2764_p6 = scmp.ne.s32.totalorder %s941_s18, %s2763_s17  ;;  %p2769_p7 = scmp.lt.u32.totalorder %s2767_s30, %s2763_s17 }
 0x341   : > { %p2771_p13 = scmp.lt.u32.totalorder %s2763_s17, %s941_s18 }
 0x342   : > { %p2765_p0 = pnand %p2764_p6, %p5772_p9  ;;  %p2770_p1 = por %p2769_p7, %p2768_p12 }
 0x344   : > { %p2766_p2 = pneg %p2765_p0  ;;  %p2772_p8 = por %p2771_p13, %p2770_p1 }
 0x346   : > { %p2773_p10 = pnand %p2772_p8, %p2766_p2 }
 0x348   : > { %2776 = shalt.err (!%p2773_p10)
}
 0x349   : > { %s2777_s5 = scalar_lea.vmem %s4734_s29, 32  ;;  %s3321_s26 = smov [#allocation28]  }
 0x34a   : > { %p2778_p5 = scmp.ne.s32.totalorder %s4734_s29, %s2777_s5  ;;  %s2781_s9 = sshll.u32 %s3321_s26, 4  ;;  %s2782_s9 = int_to_ptr.vmem [resolvable:$false] %s2781_s9 }
 0x34b   : > { %s2783_s20 = scalar_lea.vmem %s2782_s9, 64  ;;  %p2784_p4 = scmp.lt.s32.totalorder %s4734_s29, %s2782_s9 }
 0x34c   : > { %p2779_p3 = pnand %p2778_p5, %p5772_p9  ;;  %p2785_p6 = scmp.lt.s32.totalorder %s2783_s20, %s2777_s5 }
 0x34e   : > { %p2780_p11 = pneg %p2779_p3  ;;  %p2786_p0 = por %p2785_p6, %p2784_p4 }
 0x350   : > { %p2787_p12 = pnand %p2786_p0, %p2780_p11 }
 0x352   : > { %2790 = shalt.err (!%p2787_p12)
}
 0x353   : > { %1892 = dma.hbm_to_vmem [thread:$0]  (%p5772_p9), %s941_s18, 32, %s4734_s29, %s930_s27  }
 0x354 PF: > { %p1789_p2 = scmp.ge.s32.totalorder %s5536_s23, 1  ;;  %p948_p7 = scmp.lt.s32.totalorder %s5536_s23, 3 }
 0x356   : > { %p949_p1 = pnand %p1789_p2, %p948_p7 }
 0x357   : > { %s5778_s22 = sld [smem:[#allocation108_spill]] (!%p949_p1)  ;;  %s5779_s4 = sld [smem:[#allocation112_spill]] (!%p949_p1) }
 0x358   : > { %952 = sbr.rel (%p949_p1) target bundleno = 1041 (0x411), region = 84 }
 0x35d   : > { %s954_s15 = sand.u32 (!%p949_p1), 1, %s5778_s22   ;;  %p5780_p13 = scmp.ne.s32.totalorder (!%p949_p1), %s5779_s4, 0 }
 0x35e   : > { %s4761_s14 = sshll.u32 (!%p949_p1), %s954_s15, 1  ;;  %s955_s19 = scalar_lea.sflag (!%p949_p1), [#allocation5], %s954_s15 }
 0x35f   : > { %3030 = dma.done.wait (%p5780_p13), %s955_s19, 32  }
 0x360   : > { %3032 = vsyncadd (%p5780_p13), %s955_s19, 4294967264  ;;  %s5781_s3 = sld [smem:[#allocation106_spill]]  ;;  %s5782_s29 = sld [smem:[#allocation114_spill]] }
 0x361   : > { %s4769_s2 = sand.u32 1, %s3684_s16  }
 0x362   : > { %s964_s17 = scalar_lea.sflag [#allocation8], %s4769_s2 }
 0x366   : > { %s965_s18 = sand.u32 1, %s5781_s3   ;;  %p5783_p9 = scmp.ne.s32.totalorder %s5782_s29, 0 }
 0x367   : > { %s4772_s27 = sshll.u32 %s965_s18, 1 }
 0x368   : > { %3034 = dma.done.wait (%p5783_p9), %s964_s17, 32  }
 0x369   : > { %3036 = vsyncadd (%p5783_p9), %s964_s17, 4294967264  ;;  %s5784_s1 = sld [smem:[#allocation94_spill]]  ;;  %s5785_s30 = sld [smem:[#allocation116_spill]] }
 0x36f   : > { %s974_s13 = sand.u32 1, %s5784_s1   ;;  %p5786_p8 = scmp.ne.s32.totalorder %s5785_s30, 0 }
 0x370   : > { %s4781_s0 = sshll.u32 %s974_s13, 1 }
 0x371   : > { %3038 = dma.done.wait (%p5786_p8), %s964_s17, 32  }
 0x372   : > { %3040 = vsyncadd (%p5786_p8), %s964_s17, 4294967264  ;;  %s5787_s26 = sld [smem:[#allocation95_spill]]  ;;  %s5788_s9 = sld [smem:[#allocation118_spill]] }
 0x373   : > { %s982_s4 = scalar_lea.sflag [#allocation11], %s4769_s2 }
 0x378   : > { %s983_s20 = sand.u32 1, %s5787_s26   ;;  %p5789_p10 = scmp.ne.s32.totalorder %s5788_s9, 0 }
 0x379   : > { %s4789_s22 = sshll.u32 %s983_s20, 1 }
 0x37a   : > { %3042 = dma.done.wait (%p5789_p10), %s982_s4, 32  }
 0x37b   : > { %3044 = vsyncadd (%p5789_p10), %s982_s4, 4294967264  ;;  %s5790_s19 = sld [smem:[#allocation104_spill]]  ;;  %s5791_s3 = sld [smem:[#allocation121_spill]] }
 0x381   : > { %s992_s29 = sand.u32 1, %s5790_s19   ;;  %p5792_p5 = scmp.ne.s32.totalorder %s5791_s3, 0 }
 0x382   : > { %s4798_s18 = sshll.u32 %s992_s29, 1 }
 0x383   : > { %3046 = dma.done.wait (%p5792_p5), %s982_s4, 32  }
 0x384   : > { %3048 = vsyncadd (%p5792_p5), %s982_s4, 4294967264  ;;  %s5793_s1 = sld [smem:[#allocation102_spill]]  ;;  %s1000_s9 = scalar_lea.sflag [#allocation14], %s4769_s2 }
 0x385   : > { %s5794_s30 = sld [smem:[#allocation123_spill]] }
 0x38a   : > { %s1001_s13 = sand.u32 1, %s5793_s1  }
 0x38b   : > { %s4806_s26 = sshll.u32 %s1001_s13, 1  ;;  %p5795_p3 = scmp.ne.s32.totalorder %s5794_s30, 0 }
 0x38d   : > { %3050 = dma.done.wait (%p5795_p3), %s1000_s9, 32  }
 0x38e   : > { %3052 = vsyncadd (%p5795_p3), %s1000_s9, 4294967264  ;;  %s5796_s19 = sld [smem:[#allocation91_spill]]  ;;  %s5797_s29 = sld [smem:[#allocation125_spill]] }
 0x394   : > { %s1010_s17 = sand.u32 1, %s5796_s19   ;;  %p5798_p11 = scmp.ne.s32.totalorder %s5797_s29, 0 }
 0x395   : > { %s4815_s15 = sshll.u32 %s1010_s17, 1 }
 0x396   : > { %3054 = dma.done.wait (%p5798_p11), %s1000_s9, 32  }
 0x397   : > { %3056 = vsyncadd (%p5798_p11), %s1000_s9, 4294967264  ;;  %s5799_s3 = sld [smem:[#allocation99_spill]]  ;;  %s5800_s1 = sld [smem:[#allocation127_spill]] }
 0x398   : > { %s1018_s30 = scalar_lea.sflag [#allocation17], %s4769_s2 }
 0x39d   : > { %s1019_s13 = sand.u32 1, %s5799_s3   ;;  %p5801_p4 = scmp.ne.s32.totalorder %s5800_s1, 0 }
 0x39e   : > { %s4823_s20 = sshll.u32 %s1019_s13, 1 }
 0x39f   : > { %3058 = dma.done.wait (%p5801_p4), %s1018_s30, 32  }
 0x3a0   : > { %3060 = vsyncadd (%p5801_p4), %s1018_s30, 4294967264  ;;  %s5802_s17 = sld [smem:[#allocation97_spill]]  ;;  %s5803_s19 = sld [smem:[#allocation129_spill]] }
 0x3a6   : > { %s1028_s4 = sand.u32 1, %s5802_s17   ;;  %p5804_p6 = scmp.ne.s32.totalorder %s5803_s19, 0 }
 0x3a7   : > { %s4832_s11 = sshll.u32 %s1028_s4, 1 }
 0x3a8   : > { %3062 = dma.done.wait (%p5804_p6), %s1018_s30, 32  }
 0x3a9   : > { %3064 = vsyncadd (%p5804_p6), %s1018_s30, 4294967264  ;;  %s5805_s29 = sld [smem:[#allocation87_spill]]  ;;  %s5806_s3 = sld [smem:[#allocation130_spill]] }
 0x3aa   : > { %s1036_s1 = scalar_lea.sflag [#allocation20], %s4769_s2 }
 0x3af   : > { %s1037_s13 = sand.u32 1, %s5805_s29   ;;  %p5807_p0 = scmp.ne.s32.totalorder %s5806_s3, 0 }
 0x3b0   : > { %s4840_s5 = sshll.u32 %s1037_s13, 1 }
 0x3b1   : > { %3066 = dma.done.wait (%p5807_p0), %s1036_s1, 32  }
 0x3b2   : > { %3068 = vsyncadd (%p5807_p0), %s1036_s1, 4294967264  ;;  %s5808_s4 = sld [smem:[#allocation84_spill]]  ;;  %s5809_s17 = sld [smem:[#allocation132_spill]] }
 0x3b8   : > { %s1046_s9 = sand.u32 1, %s5808_s4   ;;  %p5810_p12 = scmp.ne.s32.totalorder %s5809_s17, 0 }
 0x3b9   : > { %s4849_s6 = sshll.u32 %s1046_s9, 1 }
 0x3ba   : > { %3070 = dma.done.wait (%p5810_p12), %s1036_s1, 32  }
 0x3bb   : > { %3072 = vsyncadd (%p5810_p12), %s1036_s1, 4294967264  ;;  %s5811_s19 = sld [smem:[#allocation81_spill]]  ;;  %s5812_s29 = sld [smem:[#allocation133_spill]] }
 0x3bc   : > { %s1054_s3 = scalar_lea.sflag [#allocation23], %s4769_s2 }
 0x3c1   : > { %s1055_s13 = sand.u32 1, %s5811_s19   ;;  %p5813_p2 = scmp.ne.s32.totalorder %s5812_s29, 0 }
 0x3c2   : > { %s4857_s25 = sshll.u32 %s1055_s13, 1 }
 0x3c3   : > { %3074 = dma.done.wait (%p5813_p2), %s1054_s3, 32  }
 0x3c4   : > { %3076 = vsyncadd (%p5813_p2), %s1054_s3, 4294967264  ;;  %s5814_s9 = sld [smem:[#allocation78_spill]]  ;;  %s5815_s4 = sld [smem:[#allocation135_spill]] }
 0x3ca   : > { %s1064_s30 = sand.u32 1, %s5814_s9   ;;  %p5816_p7 = scmp.ne.s32.totalorder %s5815_s4, 0 }
 0x3cb   : > { %s4866_s8 = sshll.u32 %s1064_s30, 1 }
 0x3cc   : > { %3078 = dma.done.wait (%p5816_p7), %s1054_s3, 32  }
 0x3cd   : > { %3080 = vsyncadd (%p5816_p7), %s1054_s3, 4294967264  ;;  %s5817_s17 = sld [smem:[#allocation75_spill]]  ;;  %s5818_s19 = sld [smem:[#allocation137_spill]] }
 0x3ce   : > { %s1072_s29 = scalar_lea.sflag [#allocation26], %s4769_s2 }
 0x3d3   : > { %s1073_s13 = sand.u32 1, %s5817_s17   ;;  %p5819_p1 = scmp.ne.s32.totalorder %s5818_s19, 0 }
 0x3d4   : > { %s4874_s7 = sshll.u32 %s1073_s13, 1 }
 0x3d5   : > { %3082 = dma.done.wait (%p5819_p1), %s1072_s29, 32  }
 0x3d6   : > { %3084 = vsyncadd (%p5819_p1), %s1072_s29, 4294967264  ;;  %s5820_s30 = sld [smem:[#allocation72_spill]]  ;;  %s5821_s9 = sld [smem:[#allocation138_spill]] }
 0x3dc   : > { %s1082_s1 = sand.u32 1, %s5820_s30   ;;  %p5822_p13 = scmp.ne.s32.totalorder %s5821_s9, 0 }
 0x3dd   : > { %s4883_s12 = sshll.u32 %s1082_s1, 1 }
 0x3de   : > { %s1084_s3 = scalar_lea.vmem [#allocation27], %s4883_s12 }
 0x3df   : > { %3086 = dma.done.wait (%p5822_p13), %s1072_s29, 32  }
 0x3e0   : > { %3088 = vsyncadd (%p5822_p13), %s1072_s29, 4294967264  ;;  %s5823_s4 = sld [smem:[#allocation69_spill]]  ;;  %s5824_s2 = sld [smem:[#allocation140_spill]] }
 0x3e6   : > { %s1089_s17 = sand.u32 1, %s5823_s4   ;;  %p5825_p9 = scmp.ne.s32.totalorder %s5824_s2, 0 }
 0x3e7   : > { %s4891_s13 = sshll.u32 %s1089_s17, 1  ;;  %s1090_s19 = scalar_lea.sflag [#allocation29], %s1089_s17 }
 0x3e8   : > { %3090 = dma.done.wait (%p5825_p9), %s1090_s19, 32  }
 0x3e9   : > { %3092 = vsyncadd (%p5825_p9), %s1090_s19, 4294967264  ;;  %s5826_s1 = sld [smem:[#allocation66_spill]]  ;;  %s1844_s9 = sshll.u32 %s3684_s16, 9  ;;  %v1293_v14 = vld [vmem:[%s1084_s3] sm:$0x3] }
 0x3ea   : > { %s5827_s17 = scalar_lea.vmem [#allocation4], %s4761_s14  ;;  %s5828_s19 = scalar_lea.vmem [#allocation7], %s4772_s27 }
 0x3eb   : > { %v1265_v0 = vld [vmem:[%s5827_s17] sm:$0x3]  ;;  %v1267_v1 = vld [vmem:[%s5828_s19] sm:$0x3]  ;;  %s5831_s10 = scalar_lea.vmem [#allocation12], %s4798_s18  ;;  %s5832_s14 = scalar_lea.vmem [#allocation13], %s4806_s26 }
 0x3ec   : > { %v1273_v4 = vld [vmem:[%s5831_s10] sm:$0x3]  ;;  %v1275_v5 = vld [vmem:[%s5832_s14] sm:$0x3]  ;;  %s5833_s27 = scalar_lea.vmem [#allocation15], %s4815_s15  ;;  %s5836_s10 = scalar_lea.vmem [#allocation19], %s4840_s5 }
 0x3ed   : > { %v1277_v6 = vld [vmem:[%s5833_s27] sm:$0x3]  ;;  %v1283_v9 = vld [vmem:[%s5836_s10] sm:$0x3]  ;;  %s5837_s18 = scalar_lea.vmem [#allocation21], %s4849_s6  ;;  %s5838_s15 = scalar_lea.vmem [#allocation22], %s4857_s25 }
 0x3ee   : > { %v1285_v10 = vld [vmem:[%s5837_s18] sm:$0x3]  ;;  %v1287_v11 = vld [vmem:[%s5838_s15] sm:$0x3]  ;;  %s5839_s26 = sld [smem:[#allocation143_spill]]  ;;  %s5842_s17 = sld [smem:[#allocation162_spill]] }
 0x3ef   : > { %s5356_s29 = sand.u32 1, %s5826_s1   ;;  %s5846_s12 = sand.u32 1, %s5826_s1  }
 0x3f0   : > { %s1806_s30 = sshll.u32 %s5356_s29, 5  ;;  %s5829_s29 = scalar_lea.vmem [#allocation9], %s4781_s0 }
 0x3f1   : > { %s4902_s4 = scalar_lea.vmem [#allocation30], %s1806_s30  ;;  %v1269_v2 = vld [vmem:[%s5829_s29] sm:$0x3]  ;;  %s5830_s30 = scalar_lea.vmem [#allocation10], %s4789_s22 }
 0x3f2   : > { %1266 = vst [vmem:[%s4902_s4] sm:$0x3] %v1265_v0  ;;  %1268 = vst [vmem:[%s4902_s4 + $0x2] sm:$0x3] %v1267_v1  ;;  %v1271_v3 = vld [vmem:[%s5830_s30] sm:$0x3]  ;;  %s5834_s0 = scalar_lea.vmem [#allocation16], %s4823_s20 }
 0x3f3   : > { %1270 = vst [vmem:[%s4902_s4 + $0x4] sm:$0x3] %v1269_v2  ;;  %1272 = vst [vmem:[%s4902_s4 + $0x6] sm:$0x3] %v1271_v3  ;;  %v1279_v7 = vld [vmem:[%s5834_s0] sm:$0x3] }
 0x3f4   : > { %1274 = vst [vmem:[%s4902_s4 + $0x8] sm:$0x3] %v1273_v4  ;;  %1276 = vst [vmem:[%s4902_s4 + $0xa] sm:$0x3] %v1275_v5  ;;  %s5835_s22 = scalar_lea.vmem [#allocation18], %s4832_s11  ;;  %s5840_s11 = scalar_lea.vmem [#allocation24], %s4866_s8 }
 0x3f5   : > { %v1281_v8 = vld [vmem:[%s5835_s22] sm:$0x3]  ;;  %1278 = vst [vmem:[%s4902_s4 + $0xc] sm:$0x3] %v1277_v6  ;;  %1280 = vst [vmem:[%s4902_s4 + $0xe] sm:$0x3] %v1279_v7  ;;  %s5843_s2 = smov %s5842_s17  ;;  %s4952_s19 = scalar_lea.hbm %s5842_s17, %s1844_s9 }
 0x3f6   : > { %1282 = vst [vmem:[%s4902_s4 + $0x10] sm:$0x3] %v1281_v8  ;;  %1284 = vst [vmem:[%s4902_s4 + $0x12] sm:$0x3] %v1283_v9  ;;  %v1289_v12 = vld [vmem:[%s5840_s11] sm:$0x3] }
 0x3f7   : > { %1286 = vst [vmem:[%s4902_s4 + $0x14] sm:$0x3] %v1285_v10  ;;  %1288 = vst [vmem:[%s4902_s4 + $0x16] sm:$0x3] %v1287_v11  ;;  %s5841_s20 = scalar_lea.vmem [#allocation25], %s4874_s7  ;;  %s5844_s6 = sshll.u32 %s4902_s4, 4  ;;  %s4956_s6 = int_to_ptr.vmem [resolvable:$true] %s5844_s6 }
 0x3f8   : > { %v1291_v13 = vld [vmem:[%s5841_s20] sm:$0x3]  ;;  %1290 = vst [vmem:[%s4902_s4 + $0x18] sm:$0x3] %v1289_v12  ;;  %1294 = vst [vmem:[%s4902_s4 + $0x1c] sm:$0x3] %v1293_v14 }
 0x3f9   : > { %1292 = vst [vmem:[%s4902_s4 + $0x1a] sm:$0x3] %v1291_v13  ;;  %s5845_s8 = scalar_lea.vmem [#allocation28], %s4891_s13  ;;  %s1298_s7 = scalar_lea.sflag [#allocation6], %s5846_s12 }
 0x3fa   : > { %v1295_v15 = vld [vmem:[%s5845_s8] sm:$0x3]  ;;  %s2791_s16 = scalar_lea.vmem %s4956_s6, 512  ;;  %p5847_p10 = scmp.ne.s32.totalorder %s5839_s26, 0 }
 0x3fb   : > { %1296 = vst [vmem:[%s4902_s4 + $0x1e] sm:$0x3] %v1295_v15  ;;  %p2792_p8 = scmp.ne.s32.totalorder %s4956_s6, %s2791_s16  ;;  %s3322_s25 = smov [#allocation30]  }
 0x3fc   : > { %s2795_s3 = sshll.u32 %s3322_s25, 4  ;;  %s2796_s3 = int_to_ptr.vmem [resolvable:$false] %s2795_s3 }
 0x3fd   : > { %p2793_p5 = pnand %p2792_p8, %p5847_p10  ;;  %s2797_s9 = scalar_lea.vmem %s2796_s3, 1024 }
 0x3fe   : > { %p2798_p11 = scmp.lt.s32.totalorder %s4956_s6, %s2796_s3  ;;  %p2799_p4 = scmp.lt.s32.totalorder %s2797_s9, %s2791_s16 }
 0x3ff   : > { %p2794_p3 = pneg %p2793_p5 }
 0x400   : > { %p2800_p6 = por %p2799_p4, %p2798_p11 }
 0x402   : > { %p2801_p0 = pnand %p2800_p6, %p2794_p3 }
 0x404   : > { %2804 = shalt.err (!%p2801_p0)
}
 0x405   : > { %s2805_s13 = scalar_lea.hbm %s4952_s19, 512  ;;  %s2809_s30 = scalar_lea.hbm %s5843_s2, 1024 }
 0x406   : > { %p2806_p12 = scmp.ne.s32.totalorder %s4952_s19, %s2805_s13  ;;  %p2810_p1 = scmp.lt.u32.totalorder %s4952_s19, %s5843_s2 }
 0x407   : > { %p2811_p13 = scmp.lt.u32.totalorder %s2809_s30, %s2805_s13  ;;  %p2813_p8 = scmp.lt.u32.totalorder %s2805_s13, %s4952_s19 }
 0x408   : > { %p2807_p2 = pnand %p2806_p12, %p5847_p10 }
 0x409   : > { %p2812_p9 = por %p2811_p13, %p2810_p1 }
 0x40a   : > { %p2808_p7 = pneg %p2807_p2 }
 0x40b   : > { %p2814_p5 = por %p2813_p8, %p2812_p9 }
 0x40d   : > { %p2815_p3 = pnand %p2814_p5, %p2808_p7 }
 0x40f   : > { %2818 = shalt.err (!%p2815_p3)
}
 0x410   : > { %1909 = dma.vmem_to_hbm [thread:$0]  (%p5847_p10), %s4956_s6, 512, %s4952_s19, %s1298_s7  }
 0x411 PF: > { %s5848_s0 = sld [smem:[#allocation65_spill]]  ;;  %s5849_s22 = sld [smem:[#allocation144_spill]] }
 0x412   : > { %p5851_p4 = scmp.ge.s32.totalorder %s5536_s23, 2 }
 0x417   : > { %s1324_s10 = sand.u32 1, %s5848_s0   ;;  %p5850_p11 = scmp.ne.s32.totalorder %s5849_s22, 0 }
 0x418   : > { %s1325_s18 = scalar_lea.sflag [#allocation6], %s1324_s10 }
 0x419   : > { %p1912_p6 = pnand %p5851_p4, %p5850_p11 }
 0x41b   : > { %3094 = dma.done.wait (!%p1912_p6), %s1325_s18, 512  }
 0x41c   : > { %3096 = vsyncadd (!%p1912_p6), %s1325_s18, 4294966784  ;;  %s5852_s23 = sld [smem:[#allocation110_spill]]  ;;  %s5853_s11 = sld [smem:[#allocation66_spill]] }
 0x41d   : > { %s5854_s1 = sld [smem:[#allocation67_spill]]  ;;  %s5855_s20 = sld [smem:[#allocation141_spill]] }
 0x41e   : > { %s5856_s15 = sld [smem:[#allocation69_spill]]  ;;  %s5857_s22 = sld [smem:[#allocation70_spill]] }
 0x41f   : > { %s5858_s26 = sld [smem:[#allocation142_spill]]  ;;  %s5859_s29 = sld [smem:[#allocation72_spill]] }
 0x420   : > { %s5860_s25 = sld [smem:[#allocation73_spill]]  ;;  %s5861_s17 = sld [smem:[#allocation139_spill]] }
 0x421   : > { %s5862_s27 = sld [smem:[#allocation75_spill]]  ;;  %s5863_s19 = sld [smem:[#allocation76_spill]] }
 0x422   : > { %s5864_s6 = sld [smem:[#allocation68_spill]]  ;;  %s5865_s0 = sld [smem:[#allocation78_spill]] }
 0x423   : > { %s5866_s30 = sld [smem:[#allocation79_spill]]  ;;  %p58_p10 = scmp.ge.s32.totalorder %s5852_s23, 4  }
 0x424   : > { %s5867_s18 = sld [smem:[#allocation71_spill]]  ;;  %s5868_s8 = sld [smem:[#allocation81_spill]] }
 0x425   : > { %s5869_s12 = sld [smem:[#allocation82_spill]]  ;;  %s5871_s7 = sld [smem:[#allocation84_spill]] }
 0x426   : > { %s5870_s16 = sld [smem:[#allocation74_spill]]  ;;  %5872 = sst [smem:[#allocation65_spill]] %s5856_s15 }
 0x427   : > { %s5873_s13 = sld [smem:[#allocation85_spill]]  ;;  %s5875_s23 = smov %s5858_s26 }
 0x428   : > { %s5874_s4 = sld [smem:[#allocation77_spill]]  ;;  %s5876_s3 = sld [smem:[#allocation87_spill]] }
 0x429   : > { %5877 = sst [smem:[#allocation66_spill]] %s5859_s29  ;;  %s5878_s9 = sld [smem:[#allocation88_spill]] }
 0x42a   : > { %s5879_s14 = sld [smem:[#allocation80_spill]]  ;;  %5880 = sst [smem:[#allocation67_spill]] %s5861_s17 }
 0x42b   : > { %s5881_s10 = sld [smem:[#allocation97_spill]]  ;;  %5882 = sst [smem:[#allocation68_spill]] %s5862_s27 }
 0x42c   : > { %s5883_s2 = sld [smem:[#allocation98_spill]]  ;;  %5884 = sst [smem:[#allocation69_spill]] %s5863_s19 }
 0x42d   : > { %s5885_s21 = sld [smem:[#allocation83_spill]]  ;;  %s5886_s29 = smov %s5864_s6 }
 0x42e   : > { %s5887_s24 = sld [smem:[#allocation99_spill]]  ;;  %5888 = sst [smem:[#allocation70_spill]] %s5865_s0 }
 0x42f   : > { %s5889_s28 = sld [smem:[#allocation90_spill]]  ;;  %5890 = sst [smem:[#allocation71_spill]] %s5866_s30 }
 0x430   : > { %s5891_s5 = sld [smem:[#allocation86_spill]]  ;;  %5892 = sst [smem:[#allocation72_spill]] %s5867_s18 }
 0x431   : > { %s5893_s15 = sld [smem:[#allocation91_spill]]  ;;  %s5894_s19 = smov %s5868_s8 }
 0x432   : > { %s5895_s17 = sld [smem:[#allocation100_spill]]  ;;  %5896 = sst [smem:[#allocation73_spill]] %s5869_s12 }
 0x433   : > { %s5897_s27 = sld [smem:[#allocation96_spill]]  ;;  %5898 = sst [smem:[#allocation74_spill]] %s5870_s16 }
 0x434   : > { %s5899_s26 = sld [smem:[#allocation102_spill]]  ;;  %5900 = sst [smem:[#allocation75_spill]] %s5871_s7 }
 0x435   : > { %s5901_s6 = sld [smem:[#allocation103_spill]]  ;;  %5902 = sst [smem:[#allocation76_spill]] %s5873_s13 }
 0x436   : > { %s5903_s0 = sld [smem:[#allocation89_spill]]  ;;  %5904 = sst [smem:[#allocation77_spill]] %s5874_s4 }
 0x437   : > { %s5905_s30 = sld [smem:[#allocation104_spill]]  ;;  %5906 = sst [smem:[#allocation78_spill]] %s5876_s3 }
 0x438   : > { %s5907_s18 = sld [smem:[#allocation101_spill]]  ;;  %5908 = sst [smem:[#allocation79_spill]] %s5878_s9 }
 0x439   : > { %s5909_s8 = sld [smem:[#allocation122_spill]]  ;;  %5910 = sst [smem:[#allocation80_spill]] %s5879_s14 }
 0x43a   : > { %s5911_s12 = sld [smem:[#allocation95_spill]]  ;;  %5912 = sst [smem:[#allocation81_spill]] %s5881_s10 }
 0x43b   : > { %s5913_s16 = sld [smem:[#allocation93_spill]]  ;;  %5914 = sst [smem:[#allocation82_spill]] %s5883_s2 }
 0x43c   : > { %s5915_s2 = sld [smem:[#allocation119_spill]]  ;;  %5916 = sst [smem:[#allocation83_spill]] %s5885_s21 }
 0x43d   : > { %s5917_s9 = sld [smem:[#allocation94_spill]]  ;;  %5918 = sst [smem:[#allocation84_spill]] %s5887_s24 }
 0x43e   : > { %s5919_s7 = sld [smem:[#allocation105_spill]]  ;;  %5920 = sst [smem:[#allocation85_spill]] %s5889_s28 }
 0x43f   : > { %s5921_s4 = sld [smem:[#allocation117_spill]]  ;;  %5922 = sst [smem:[#allocation86_spill]] %s5891_s5 }
 0x440   : > { %s5923_s3 = sld [smem:[#allocation106_spill]]  ;;  %5924 = sst [smem:[#allocation87_spill]] %s5893_s15 }
 0x441   : > { %s5925_s14 = sld [smem:[#allocation107_spill]]  ;;  %5926 = sst [smem:[#allocation88_spill]] %s5895_s17 }
 0x442   : > { %s5927_s10 = sld [smem:[#allocation92_spill]]  ;;  %5928 = sst [smem:[#allocation89_spill]] %s5897_s27 }
 0x443   : > { %s5929_s13 = sld [smem:[#allocation108_spill]]  ;;  %5930 = sst [smem:[#allocation90_spill]] %s5899_s26 }
 0x444   : > { %s5931_s21 = sld [smem:[#allocation109_spill]]  ;;  %5932 = sst [smem:[#allocation91_spill]] %s5901_s6 }
 0x445   : > { %s5933_s24 = sld [smem:[#allocation113_spill]]  ;;  %5934 = sst [smem:[#allocation92_spill]] %s5903_s0 }
 0x446   : > { %s5935_s28 = sld [smem:[#allocation110_spill]]  ;;  %5936 = sst [smem:[#allocation93_spill]] %s5905_s30 }
 0x447   : > { %5937 = sst [smem:[#allocation94_spill]] %s5907_s18  ;;  %s5943_s5 = smov %s5921_s4 }
 0x448   : > { %5938 = sst [smem:[#allocation95_spill]] %s5909_s8 }
 0x449   : > { %5939 = sst [smem:[#allocation96_spill]] %s5911_s12 }
 0x44a   : > { %5940 = sst [smem:[#allocation97_spill]] %s5913_s16 }
 0x44b   : > { %5941 = sst [smem:[#allocation98_spill]] %s5915_s2  ;;  %60 = sbr.rel (!%p58_p10) target bundleno = 91 (0x5b), region = 310 }
 0x44c   : > { %5942 = sst [smem:[#allocation99_spill]] %s5919_s7 }
 0x44d   : > { %5944 = sst [smem:[#allocation100_spill]] %s5927_s10 }
 0x44e   : > { %5945 = sst [smem:[#allocation101_spill]] %s5929_s13 }
 0x44f   : > { %5946 = sst [smem:[#allocation102_spill]] %s5931_s21 }
 0x450   : > { %5947 = sst [smem:[#allocation103_spill]] %s5933_s24 }
 0x451   : > { %5948 = sst [smem:[#allocation104_spill]] %s5935_s28 }
 0x452   :  { %1330 = vsyncpa [#allocation5], 1 }
 0x453   :  { %1332 = vsyncpa [#allocation5 + $0x1], 1 }
 0x454   :  { %1333 = vsyncpa [#allocation8], 1 }
 0x455   :  { %1335 = vsyncpa [#allocation8 + $0x1], 1 }
 0x456   :  { %1336 = vsyncpa [#allocation11], 1 }
 0x457   :  { %1338 = vsyncpa [#allocation11 + $0x1], 1 }
 0x458   :  { %1339 = vsyncpa [#allocation14], 1 }
 0x459   :  { %1341 = vsyncpa [#allocation14 + $0x1], 1 }
 0x45a   :  { %1342 = vsyncpa [#allocation17], 1 }
 0x45b   :  { %1344 = vsyncpa [#allocation17 + $0x1], 1 }
 0x45c   :  { %1345 = vsyncpa [#allocation20], 1 }
 0x45d   :  { %1347 = vsyncpa [#allocation20 + $0x1], 1 }
 0x45e   :  { %1348 = vsyncpa [#allocation23], 1 }
 0x45f   :  { %1350 = vsyncpa [#allocation23 + $0x1], 1 }
 0x460   :  { %1351 = vsyncpa [#allocation26], 1 }
 0x461   :  { %1353 = vsyncpa [#allocation26 + $0x1], 1 }
 0x462   :  { %1354 = vsyncpa [#allocation29], 1 }
 0x463   :  { %1356 = vsyncpa [#allocation29 + $0x1], 1 }
 0x464   :  { %1357 = vsyncpa [#allocation6], 1 }
 0x465   :  { %1359 = vsyncpa [#allocation6 + $0x1], 1 }

</bundles_post_ra>
